<compile_context>
chip_gen: v6e
topology: v6e:2x2x1
jax: 0.10.0
libtpu: 0.0.40
codegen_flags: <defaults>
</compile_context>

<pallas_src>
import jax
import jax.numpy as jnp
from jax.experimental import pallas as pl
from jax.experimental.pallas import tpu as pltpu

ALPHA = 0.05          # LoRA scaling used in the module's forward()
PAD_TOP = 8           # zero rows above the packed interior (8-aligned interior stores)
PAD_BOT = 8           # zero rows below the packed interior
LANE = 128
PRE_COUT = 8
MAX_ACC_ELEMS = 64 * 256   # cap the f32 accumulator of one matmul chunk at ~16 vregs

STAGES = (  # name, (cin, cout), stride   (stride 1 only for layer1, per the module)
    ("layer1", (8, 8), 1),
    ("layer2", (8, 16), 2),
    ("layer3", (16, 32), 2),
    ("layer4", (32, 64), 2),
)


# --------------------------- weight preprocessing --------------------------- #

def _conv_as_slab_mats(w_hwio, w_in, w_out, stride):
    """3x3 conv weights (3,3,Cin,Cq) -> per-kh matrices (3, w_in*Cin, w_out*Cq).

    Activation slab column w*Cin+ci holds x[h, w, ci]; output column wo*Cq+cq holds
    y[ho, wo, cq].  Horizontal taps, horizontal stride and width zero-padding are folded in:
      B[kh][w*Cin+ci, wo*Cq+cq] = w_hwio[kh, w - stride*wo + 1, ci, cq]   (0 if tap is OOB).
    """
    cin, cq = w_hwio.shape[2], w_hwio.shape[3]
    w_idx = jnp.arange(w_in)[:, None]
    wo_idx = jnp.arange(w_out)[None, :]
    mats = []
    for kh in range(3):
        bk = jnp.zeros((w_in * cin, w_out * cq), jnp.float32)
        for kw in range(3):
            place = (w_idx == stride * wo_idx + kw - 1).astype(jnp.float32)  # (w_in, w_out)
            bk = bk + jnp.kron(place, w_hwio[kh, kw].astype(jnp.float32))
        mats.append(bk)
    return jnp.stack(mats, axis=0)


def _row_chunks(m_tot, ncol):
    """Static (row0, nrows) chunks so the f32 accumulator stays <= MAX_ACC_ELEMS."""
    nch = max(1, -(-(m_tot * ncol) // MAX_ACC_ELEMS))
    rows = -(-m_tot // nch)
    rows = ((rows + 7) // 8) * 8
    chunks, r0 = [], 0
    while r0 < m_tot:
        chunks.append((r0, min(rows, m_tot - r0)))
        r0 += rows
    return tuple(chunks)


# ------------------------------ Pallas kernel ------------------------------- #

def _build_kernel(meta, bb):
    n_stages = len(meta)

    def kernel(*refs):
        x_ref = refs[0]
        stage_refs = refs[1:1 + 3 * n_stages]            # (B, bias, row-mask) per stage
        pool_ref = refs[1 + 3 * n_stages]                 # (BB, M4) per-image pooling selector
        g_ref = refs[2 + 3 * n_stages]                     # pooled -> padded logits matrix
        fcb_ref = refs[3 + 3 * n_stages]                   # padded fc bias
        o_ref = refs[4 + 3 * n_stages]
        bufs = refs[5 + 3 * n_stages:]                     # per-stage packed activation buffers

        # ---- pad/gap row upkeep (cheap; interior rows get fully overwritten below).
        # Done every step (not @pl.when(program_id==0)) so it stays correct when the
        # "parallel" grid axis is sharded across v7x's two TensorCores.
        buf0 = bufs[0]
        buf0[...] = jnp.zeros(buf0.shape, buf0.dtype)      # input buffer: pads + inter-image gaps
        for si in range(1, n_stages):
            b = bufs[si]
            lanes = b.shape[1]
            interior = meta[si]["interior"]
            b[pl.ds(0, PAD_TOP), :] = jnp.zeros((PAD_TOP, lanes), b.dtype)
            b[pl.ds(PAD_TOP + interior, PAD_BOT), :] = jnp.zeros((PAD_BOT, lanes), b.dtype)

        # ---- place the BB input images into their slots of the stage-0 buffer ----
        m0 = meta[0]
        for i in range(bb):
            buf0[pl.ds(PAD_TOP + i * m0["slot"], m0["hin"]), :] = x_ref[i].astype(buf0.dtype)

        # ---- conv stages: 3x3 conv == 3 row-shifted MXU matmuls over the whole batch block ----
        for si, m in enumerate(meta):
            b_ref = stage_refs[3 * si]
            bias_ref = stage_refs[3 * si + 1]
            mask_ref = stage_refs[3 * si + 2]
            in_buf, out_buf = bufs[si], bufs[si + 1]
            s, ncol = m["stride"], m["ncol"]
            out_off = PAD_TOP if si + 1 < n_stages else 0   # head buffer has no pad rows

            for (row0, nrows) in m["chunks"]:
                acc = jnp.zeros((nrows, ncol), jnp.float32)
                for kh in range(3):
                    start = PAD_TOP - 1 + kh + s * row0
                    if s == 1:
                        lhs = in_buf[pl.ds(start, nrows), :]
                    else:
                        lhs = in_buf[pl.ds(start, nrows, stride=s), :]
                    acc = acc + jnp.dot(lhs.astype(jnp.bfloat16), b_ref[kh],
                                        preferred_element_type=jnp.float32)
                acc = acc + bias_ref[...]
                if m["lora"]:
                    half = m["half"]                        # 128-lane aligned [main | lora] split
                    out = jnp.maximum(acc[:, :half], 0.0) + ALPHA * acc[:, half:]
                else:
                    out = jnp.maximum(acc, 0.0)
                # zero the inter-image gap rows so they act as the next stage's zero padding
                out = out * mask_ref[pl.ds(row0, nrows), :]
                out_buf[pl.ds(out_off + row0, nrows), :] = out.astype(out_buf.dtype)

        # ---- head: per-image global average pool + fc as two small bf16 matmuls ----
        hb = bufs[n_stages]                                 # (M4, 128) bf16 layer4 output
        pooled = jnp.dot(pool_ref[...], hb[...], preferred_element_type=jnp.float32)  # (BB,128)
        logits = jnp.dot(pooled.astype(jnp.bfloat16), g_ref[...],
                         preferred_element_type=jnp.float32) + fcb_ref[...]
        o_ref[0] = logits.astype(o_ref.dtype)

    return kernel


# --------------------------------- wrapper ---------------------------------- #

@jax.jit
def lora_forward(x_nchw, params):
    n, cin0, h0, w0 = x_nchw.shape
    assert h0 % 8 == 0 and w0 % 8 == 0, "spatial dims must survive the three stride-2 stages"

    # batch block size: big M for the MXU, but keep >= 2 grid steps so both v7x TCs run
    bb = max(1, min(8, n // 2))
    grid_n = -(-n // bb)
    n_pad = grid_n * bb

    x = jnp.transpose(x_nchw, (0, 2, 3, 1)).astype(jnp.bfloat16)        # NHWC, bf16 HBM slab
    if n_pad != n:
        x = jnp.concatenate([x, jnp.zeros((n_pad - n, h0, w0, cin0), x.dtype)], axis=0)
    x_slab = x.reshape(n_pad, h0, w0 * cin0)

    stage_defs = [("pre", (cin0, PRE_COUT), 1, False)]
    stage_defs += [(name, io, stride, True) for name, io, stride in STAGES]

    # inter-image zero-gap chain: gap(stage k) = stride_k * gap(stage k+1); last output gap = 1.
    gaps, g = [], 1
    for (_, _, stride, _) in reversed(stage_defs):
        g = stride * g
        gaps.append(g)
    gaps = gaps[::-1]

    meta, const_arrays = [], []
    h, w = h0, w0
    for k, (name, (cin, cout), stride, lora) in enumerate(stage_defs):
        ho, wo = h // stride, w // stride
        gap = gaps[k]                       # zero rows after each image in this stage's input
        g_out = gap // stride               # garbage rows after each image in this stage's output
        slot = h + gap
        m_tot = bb * (ho + g_out)

        b_main = _conv_as_slab_mats(params[f"{name}_w"], w, wo, stride)
        if lora:
            assert wo * cout == LANE, "main/lora split must be 128-lane aligned"
            b_lora = _conv_as_slab_mats(params[f"{name}_lora_w"], w, wo, stride)
            b_mat = jnp.concatenate([b_main, b_lora], axis=-1)          # columns = [main | lora]
            bias = jnp.concatenate([jnp.tile(params[f"{name}_b"], wo),
                                    jnp.tile(params[f"{name}_lora_b"], wo)])[None]
        else:
            b_mat = b_main
            bias = jnp.tile(params[f"{name}_b"], wo)[None]
        ncol = b_mat.shape[-1]

        row_in_slot = jnp.arange(m_tot) % (ho + g_out)
        mask = (row_in_slot < ho).astype(jnp.float32)[:, None]          # 1 = real row, 0 = gap

        const_arrays += [b_mat.astype(jnp.bfloat16), bias.astype(jnp.float32), mask]
        meta.append(dict(hin=h, win=w, cin=cin, ho=ho, wo=wo, cout=cout, stride=stride,
                         lora=lora, gap=gap, g_out=g_out, slot=slot, m_tot=m_tot,
                         ncol=ncol, half=wo * cout, interior=bb * slot,
                         chunks=_row_chunks(m_tot, ncol)))
        h, w = ho, wo

    # head: fold 1/(h*w), wo lane-tiling and class padding into g; pool selects real rows.
    num_classes = params["fc_w"].shape[-1]
    assert num_classes <= LANE
    m_head = meta[-1]["m_tot"]
    period = meta[-1]["ho"] + meta[-1]["g_out"]
    rows = jnp.arange(m_head)
    pool = (((rows % period) < meta[-1]["ho"])[None, :]
            & ((rows // period)[None, :] == jnp.arange(bb)[:, None])).astype(jnp.float32)
    g_mat = jnp.tile(params["fc_w"], (w, 1)) / float(h * w)
    g_mat = jnp.pad(g_mat, ((0, 0), (0, LANE - num_classes)))
    fcb = jnp.pad(params["fc_b"], (0, LANE - num_classes))[None]

    const_arrays += [pool.astype(jnp.bfloat16), g_mat.astype(jnp.bfloat16),
                     fcb.astype(jnp.float32)]

    def _const_spec(arr):
        nd = arr.ndim
        return pl.BlockSpec(arr.shape, lambda i, nd=nd: (0,) * nd)

    in_specs = [pl.BlockSpec((bb, h0, w0 * cin0), lambda i: (i, 0, 0))]
    in_specs += [_const_spec(a) for a in const_arrays]

    scratch = [pltpu.VMEM((PAD_TOP + m["interior"] + PAD_BOT, m["win"] * m["cin"]), jnp.float32)
               for m in meta]
    scratch.append(pltpu.VMEM((m_head, LANE), jnp.bfloat16))            # layer4 output / head buf

    kernel = _build_kernel(meta, bb)

    out = pl.pallas_call(
        kernel,
        out_shape=jax.ShapeDtypeStruct((grid_n, bb, LANE), jnp.float32),
        grid=(grid_n,),
        in_specs=in_specs,
        out_specs=pl.BlockSpec((1, bb, LANE), lambda i: (i, 0, 0)),
        scratch_shapes=scratch,
        compiler_params=pltpu.CompilerParams(
            dimension_semantics=("parallel",),
            vmem_limit_bytes=32 * 1024 * 1024),
    )(x_slab, *const_arrays)

    return out.reshape(n_pad, LANE)[:n, :num_classes]


# ------------------------------- model setup -------------------------------- #

def init_params(key, in_channels=4, num_classes=10):
    params = {}
    key, kpre, kpb = jax.random.split(key, 3)
    params["pre_w"] = 0.1 * jax.random.normal(kpre, (3, 3, in_channels, PRE_COUT), jnp.float32)
    params["pre_b"] = 0.1 * jax.random.normal(kpb, (PRE_COUT,), jnp.float32)
    for name, (cin, cout), _ in STAGES:
        key, kw, kb = jax.random.split(key, 3)
        params[f"{name}_w"] = 0.1 * jax.random.normal(kw, (3, 3, cin, cout), jnp.float32)
        params[f"{name}_b"] = 0.1 * jax.random.normal(kb, (cout,), jnp.float32)
        # LoRA params: constant-zero init, exactly like initialize_lora_parameters().
        params[f"{name}_lora_w"] = jnp.zeros((3, 3, cin, cout), jnp.float32)
        params[f"{name}_lora_b"] = jnp.zeros((cout,), jnp.float32)
    key, kfc, kfb = jax.random.split(key, 3)
    params["fc_w"] = 0.1 * jax.random.normal(kfc, (STAGES[-1][1][1], num_classes), jnp.float32)
    params["fc_b"] = 0.1 * jax.random.normal(kfb, (num_classes,), jnp.float32)
    return params


# ----------------------------- pure-JAX reference ---------------------------- #

def _ref_conv(x, w, b, stride):
    out = jax.lax.conv_general_dilated(
        x, w, window_strides=(stride, stride), padding=((1, 1), (1, 1)),
        dimension_numbers=("NHWC", "HWIO", "NHWC"))
    return out + b.reshape(1, 1, 1, -1)


def ref_forward(x_nchw, params):
    x = jnp.transpose(x_nchw, (0, 2, 3, 1))
    x = jnp.maximum(_ref_conv(x, params["pre_w"], params["pre_b"], 1), 0.0)
    for name, _, stride in STAGES:
        main = jnp.maximum(_ref_conv(x, params[f"{name}_w"], params[f"{name}_b"], stride), 0.0)
        lora = _ref_conv(x, params[f"{name}_lora_w"], params[f"{name}_lora_b"], stride)
        x = main + ALPHA * lora
    pooled = jnp.mean(x, axis=(1, 2))
    return pooled @ params["fc_w"] + params["fc_b"]


# ----------------------------------- main ------------------------------------ #

if __name__ == "__main__":
    key = jax.random.PRNGKey(0)
    kx, kp, kl = jax.random.split(key, 3)
    x = jax.random.normal(kx, (2, 4, 16, 16), jnp.float32)      # NCHW, like PyTorch
    params = init_params(kp, in_channels=4, num_classes=10)

    # 1) Module as constructed (LoRA weights zero-initialized).  batch=2 -> BB=1, grid=2.
    out = jax.block_until_ready(lora_forward(x, params))
    ref = ref_forward(x, params)
    assert out.shape == (2, 10), out.shape
    assert jnp.allclose(out, ref, atol=3e-2, rtol=5e-2), "mismatch vs JAX reference (zero LoRA)"

    # 2) Same forward with non-zero (as-if-trained) LoRA params to exercise the fused LoRA path.
    params_tr = dict(params)
    for name, (cin, cout), _ in STAGES:
        kl, k1, k2 = jax.random.split(kl, 3)
        params_tr[f"{name}_lora_w"] = 0.1 * jax.random.normal(k1, (3, 3, cin, cout), jnp.float32)
        params_tr[f"{name}_lora_b"] = 0.1 * jax.random.normal(k2, (cout,), jnp.float32)
    out_tr = jax.block_until_ready(lora_forward(x, params_tr))
    ref_tr = ref_forward(x, params_tr)
    assert jnp.allclose(out_tr, ref_tr, atol=3e-2, rtol=5e-2), "mismatch vs JAX reference (LoRA)"

    # 3) Larger batch exercising the batch-blocked path (BB=5, 3 grid steps, batch padding,
    #    multi-chunk accumulators) against the same reference.
    xb = jax.random.normal(jax.random.PRNGKey(7), (11, 4, 16, 16), jnp.float32)
    out_b = jax.block_until_ready(lora_forward(xb, params_tr))
    ref_b = ref_forward(xb, params_tr)
    assert out_b.shape == (11, 10), out_b.shape
    assert jnp.allclose(out_b, ref_b, atol=3e-2, rtol=5e-2), "mismatch vs JAX reference (batched)"

    print("KERNEL_OK")
</pallas_src>

<mosaic_0001>
module attributes {stable_mosaic.version = 11 : i64} {
  func.func @kernel(%arg0: i32, %arg1: memref<1x16x64xbf16, #tpu.memory_space<vmem>>, %arg2: memref<3x64x128xbf16, #tpu.memory_space<vmem>>, %arg3: memref<1x128xf32, #tpu.memory_space<vmem>>, %arg4: memref<24x1xf32, #tpu.memory_space<vmem>>, %arg5: memref<3x128x256xbf16, #tpu.memory_space<vmem>>, %arg6: memref<1x256xf32, #tpu.memory_space<vmem>>, %arg7: memref<24x1xf32, #tpu.memory_space<vmem>>, %arg8: memref<3x128x256xbf16, #tpu.memory_space<vmem>>, %arg9: memref<1x256xf32, #tpu.memory_space<vmem>>, %arg10: memref<12x1xf32, #tpu.memory_space<vmem>>, %arg11: memref<3x128x256xbf16, #tpu.memory_space<vmem>>, %arg12: memref<1x256xf32, #tpu.memory_space<vmem>>, %arg13: memref<6x1xf32, #tpu.memory_space<vmem>>, %arg14: memref<3x128x256xbf16, #tpu.memory_space<vmem>>, %arg15: memref<1x256xf32, #tpu.memory_space<vmem>>, %arg16: memref<3x1xf32, #tpu.memory_space<vmem>>, %arg17: memref<1x3xbf16, #tpu.memory_space<vmem>>, %arg18: memref<128x128xbf16, #tpu.memory_space<vmem>>, %arg19: memref<1x128xf32, #tpu.memory_space<vmem>>, %arg20: memref<1x1x128xf32, #tpu.memory_space<vmem>>, %arg21: memref<40x64xf32, #tpu.memory_space<vmem>>, %arg22: memref<40x128xf32, #tpu.memory_space<vmem>>, %arg23: memref<40x128xf32, #tpu.memory_space<vmem>>, %arg24: memref<28x128xf32, #tpu.memory_space<vmem>>, %arg25: memref<22x128xf32, #tpu.memory_space<vmem>>, %arg26: memref<3x128xbf16, #tpu.memory_space<vmem>>) attributes {dimension_semantics = [#tpu.dimension_semantics<parallel>], iteration_bounds = array<i64: 2>, scalar_prefetch = 0 : i64, scratch_operands = 6 : i64, tpu.core_type = #tpu.core_type<tc>, window_params = [{transform_indices = @transform_0, window_bounds = array<i64: 1, 16, 64>}, {pipeline_mode = #tpu.pipeline_mode<synchronous>, transform_indices = @transform_1, window_bounds = array<i64: 3, 64, 128>}, {pipeline_mode = #tpu.pipeline_mode<synchronous>, transform_indices = @transform_2, window_bounds = array<i64: 1, 128>}, {pipeline_mode = #tpu.pipeline_mode<synchronous>, transform_indices = @transform_3, window_bounds = array<i64: 24, 1>}, {pipeline_mode = #tpu.pipeline_mode<synchronous>, transform_indices = @transform_4, window_bounds = array<i64: 3, 128, 256>}, {pipeline_mode = #tpu.pipeline_mode<synchronous>, transform_indices = @transform_5, window_bounds = array<i64: 1, 256>}, {pipeline_mode = #tpu.pipeline_mode<synchronous>, transform_indices = @transform_6, window_bounds = array<i64: 24, 1>}, {pipeline_mode = #tpu.pipeline_mode<synchronous>, transform_indices = @transform_7, window_bounds = array<i64: 3, 128, 256>}, {pipeline_mode = #tpu.pipeline_mode<synchronous>, transform_indices = @transform_8, window_bounds = array<i64: 1, 256>}, {pipeline_mode = #tpu.pipeline_mode<synchronous>, transform_indices = @transform_9, window_bounds = array<i64: 12, 1>}, {pipeline_mode = #tpu.pipeline_mode<synchronous>, transform_indices = @transform_10, window_bounds = array<i64: 3, 128, 256>}, {pipeline_mode = #tpu.pipeline_mode<synchronous>, transform_indices = @transform_11, window_bounds = array<i64: 1, 256>}, {pipeline_mode = #tpu.pipeline_mode<synchronous>, transform_indices = @transform_12, window_bounds = array<i64: 6, 1>}, {pipeline_mode = #tpu.pipeline_mode<synchronous>, transform_indices = @transform_13, window_bounds = array<i64: 3, 128, 256>}, {pipeline_mode = #tpu.pipeline_mode<synchronous>, transform_indices = @transform_14, window_bounds = array<i64: 1, 256>}, {pipeline_mode = #tpu.pipeline_mode<synchronous>, transform_indices = @transform_15, window_bounds = array<i64: 3, 1>}, {pipeline_mode = #tpu.pipeline_mode<synchronous>, transform_indices = @transform_16, window_bounds = array<i64: 1, 3>}, {pipeline_mode = #tpu.pipeline_mode<synchronous>, transform_indices = @transform_17, window_bounds = array<i64: 128, 128>}, {pipeline_mode = #tpu.pipeline_mode<synchronous>, transform_indices = @transform_18, window_bounds = array<i64: 1, 128>}, {transform_indices = @transform_19, window_bounds = array<i64: 1, 1, 128>}]} {
    %cst = arith.constant 0.000000e+00 : f32
    %0 = vector.broadcast %cst : f32 to vector<40x64xf32>
    %c0 = arith.constant 0 : index
    %c0_0 = arith.constant 0 : index
    %1 = vector.load %arg21[%c0, %c0_0] : memref<40x64xf32, #tpu.memory_space<vmem>>, vector<40x64xf32>
    tpu.vector_store %arg21[%c0, %c0_0], %0 {strides = array<i32>} : memref<40x64xf32, #tpu.memory_space<vmem>>, vector<40x64xf32>,
    %cst_1 = arith.constant 0.000000e+00 : f32
    %2 = vector.broadcast %cst_1 : f32 to vector<8x128xf32>
    %c0_2 = arith.constant 0 : index
    %c0_3 = arith.constant 0 : index
    %3 = vector.load %arg22[%c0_2, %c0_3] : memref<40x128xf32, #tpu.memory_space<vmem>>, vector<8x128xf32>
    tpu.vector_store %arg22[%c0_2, %c0_3], %2 {strides = array<i32>} : memref<40x128xf32, #tpu.memory_space<vmem>>, vector<8x128xf32>,
    %cst_4 = arith.constant 0.000000e+00 : f32
    %4 = vector.broadcast %cst_4 : f32 to vector<8x128xf32>
    %c32 = arith.constant 32 : index
    %c0_5 = arith.constant 0 : index
    %5 = vector.load %arg22[%c32, %c0_5] : memref<40x128xf32, #tpu.memory_space<vmem>>, vector<8x128xf32>
    tpu.vector_store %arg22[%c32, %c0_5], %4 {strides = array<i32>} : memref<40x128xf32, #tpu.memory_space<vmem>>, vector<8x128xf32>,
    %cst_6 = arith.constant 0.000000e+00 : f32
    %6 = vector.broadcast %cst_6 : f32 to vector<8x128xf32>
    %c0_7 = arith.constant 0 : index
    %c0_8 = arith.constant 0 : index
    %7 = vector.load %arg23[%c0_7, %c0_8] : memref<40x128xf32, #tpu.memory_space<vmem>>, vector<8x128xf32>
    tpu.vector_store %arg23[%c0_7, %c0_8], %6 {strides = array<i32>} : memref<40x128xf32, #tpu.memory_space<vmem>>, vector<8x128xf32>,
    %cst_9 = arith.constant 0.000000e+00 : f32
    %8 = vector.broadcast %cst_9 : f32 to vector<8x128xf32>
    %c32_10 = arith.constant 32 : index
    %c0_11 = arith.constant 0 : index
    %9 = vector.load %arg23[%c32_10, %c0_11] : memref<40x128xf32, #tpu.memory_space<vmem>>, vector<8x128xf32>
    tpu.vector_store %arg23[%c32_10, %c0_11], %8 {strides = array<i32>} : memref<40x128xf32, #tpu.memory_space<vmem>>, vector<8x128xf32>,
    %cst_12 = arith.constant 0.000000e+00 : f32
    %10 = vector.broadcast %cst_12 : f32 to vector<8x128xf32>
    %c0_13 = arith.constant 0 : index
    %c0_14 = arith.constant 0 : index
    %11 = vector.load %arg24[%c0_13, %c0_14] : memref<28x128xf32, #tpu.memory_space<vmem>>, vector<8x128xf32>
    tpu.vector_store %arg24[%c0_13, %c0_14], %10 {strides = array<i32>} : memref<28x128xf32, #tpu.memory_space<vmem>>, vector<8x128xf32>,
    %cst_15 = arith.constant 0.000000e+00 : f32
    %12 = vector.broadcast %cst_15 : f32 to vector<8x128xf32>
    %c20 = arith.constant 20 : index
    %c0_16 = arith.constant 0 : index
    %13 = vector.load %arg24[%c20, %c0_16] : memref<28x128xf32, #tpu.memory_space<vmem>>, vector<8x128xf32>
    tpu.vector_store %arg24[%c20, %c0_16], %12 {strides = array<i32>} : memref<28x128xf32, #tpu.memory_space<vmem>>, vector<8x128xf32>,
    %cst_17 = arith.constant 0.000000e+00 : f32
    %14 = vector.broadcast %cst_17 : f32 to vector<8x128xf32>
    %c0_18 = arith.constant 0 : index
    %c0_19 = arith.constant 0 : index
    %15 = vector.load %arg25[%c0_18, %c0_19] : memref<22x128xf32, #tpu.memory_space<vmem>>, vector<8x128xf32>
    tpu.vector_store %arg25[%c0_18, %c0_19], %14 {strides = array<i32>} : memref<22x128xf32, #tpu.memory_space<vmem>>, vector<8x128xf32>,
    %cst_20 = arith.constant 0.000000e+00 : f32
    %16 = vector.broadcast %cst_20 : f32 to vector<8x128xf32>
    %c14 = arith.constant 14 : index
    %c0_21 = arith.constant 0 : index
    %17 = vector.load %arg25[%c14, %c0_21] : memref<22x128xf32, #tpu.memory_space<vmem>>, vector<8x128xf32>
    tpu.vector_store %arg25[%c14, %c0_21], %16 {strides = array<i32>} : memref<22x128xf32, #tpu.memory_space<vmem>>, vector<8x128xf32>,
    %c0_22 = arith.constant 0 : index
    %c0_23 = arith.constant 0 : index
    %c0_24 = arith.constant 0 : index
    %18 = vector.load %arg1[%c0_22, %c0_23, %c0_24] : memref<1x16x64xbf16, #tpu.memory_space<vmem>>, vector<1x16x64xbf16>
    %19 = vector.shape_cast %18 : vector<1x16x64xbf16> to vector<16x64xbf16>
    %20 = arith.extf %19 : vector<16x64xbf16> to vector<16x64xf32>
    %c8 = arith.constant 8 : index
    %c0_25 = arith.constant 0 : index
    %21 = vector.load %arg21[%c8, %c0_25] : memref<40x64xf32, #tpu.memory_space<vmem>>, vector<16x64xf32>
    tpu.vector_store %arg21[%c8, %c0_25], %20 {strides = array<i32>} : memref<40x64xf32, #tpu.memory_space<vmem>>, vector<16x64xf32>,
    %cst_26 = arith.constant 0.000000e+00 : f32
    %22 = vector.broadcast %cst_26 : f32 to vector<24x128xf32>
    %c7 = arith.constant 7 : index
    %c0_27 = arith.constant 0 : index
    %23 = vector.load %arg21[%c7, %c0_27] : memref<40x64xf32, #tpu.memory_space<vmem>>, vector<24x64xf32>
    %24 = arith.truncf %23 : vector<24x64xf32> to vector<24x64xbf16>
    %c0_28 = arith.constant 0 : index
    %c0_29 = arith.constant 0 : index
    %c0_30 = arith.constant 0 : index
    %25 = vector.load %arg2[%c0_28, %c0_29, %c0_30] : memref<3x64x128xbf16, #tpu.memory_space<vmem>>, vector<1x64x128xbf16>
    %26 = vector.shape_cast %25 : vector<1x64x128xbf16> to vector<64x128xbf16>
    %cst_31 = arith.constant dense<0.000000e+00> : vector<24x128xf32>
    %27 = tpu.matmul %24, %26, %cst_31 {dimension_numbers = #tpu.dot_dimension_numbers<[1], [0], [0], [1], [0, 0, 1, 1], [], []>} : vector<24x64xbf16>, vector<64x128xbf16>, vector<24x128xf32> -> vector<24x128xf32>
    %28 = arith.addf %22, %27 : vector<24x128xf32>
    %c8_32 = arith.constant 8 : index
    %c0_33 = arith.constant 0 : index
    %29 = vector.load %arg21[%c8_32, %c0_33] : memref<40x64xf32, #tpu.memory_space<vmem>>, vector<24x64xf32>
    %30 = arith.truncf %29 : vector<24x64xf32> to vector<24x64xbf16>
    %c1 = arith.constant 1 : index
    %c0_34 = arith.constant 0 : index
    %c0_35 = arith.constant 0 : index
    %31 = vector.load %arg2[%c1, %c0_34, %c0_35] : memref<3x64x128xbf16, #tpu.memory_space<vmem>>, vector<1x64x128xbf16>
    %32 = vector.shape_cast %31 : vector<1x64x128xbf16> to vector<64x128xbf16>
    %cst_36 = arith.constant dense<0.000000e+00> : vector<24x128xf32>
    %33 = tpu.matmul %30, %32, %cst_36 {dimension_numbers = #tpu.dot_dimension_numbers<[1], [0], [0], [1], [0, 0, 1, 1], [], []>} : vector<24x64xbf16>, vector<64x128xbf16>, vector<24x128xf32> -> vector<24x128xf32>
    %34 = arith.addf %28, %33 : vector<24x128xf32>
    %c9 = arith.constant 9 : index
    %c0_37 = arith.constant 0 : index
    %35 = vector.load %arg21[%c9, %c0_37] : memref<40x64xf32, #tpu.memory_space<vmem>>, vector<24x64xf32>
    %36 = arith.truncf %35 : vector<24x64xf32> to vector<24x64xbf16>
    %c2 = arith.constant 2 : index
    %c0_38 = arith.constant 0 : index
    %c0_39 = arith.constant 0 : index
    %37 = vector.load %arg2[%c2, %c0_38, %c0_39] : memref<3x64x128xbf16, #tpu.memory_space<vmem>>, vector<1x64x128xbf16>
    %38 = vector.shape_cast %37 : vector<1x64x128xbf16> to vector<64x128xbf16>
    %cst_40 = arith.constant dense<0.000000e+00> : vector<24x128xf32>
    %39 = tpu.matmul %36, %38, %cst_40 {dimension_numbers = #tpu.dot_dimension_numbers<[1], [0], [0], [1], [0, 0, 1, 1], [], []>} : vector<24x64xbf16>, vector<64x128xbf16>, vector<24x128xf32> -> vector<24x128xf32>
    %40 = arith.addf %34, %39 : vector<24x128xf32>
    %c0_41 = arith.constant 0 : index
    %c0_42 = arith.constant 0 : index
    %41 = vector.load %arg3[%c0_41, %c0_42] : memref<1x128xf32, #tpu.memory_space<vmem>>, vector<1x128xf32>
    %42 = vector.broadcast %41 : vector<1x128xf32> to vector<24x128xf32>
    %43 = arith.addf %40, %42 : vector<24x128xf32>
    %cst_43 = arith.constant 0.000000e+00 : f32
    %44 = vector.broadcast %cst_43 : f32 to vector<24x128xf32>
    %45 = arith.maximumf %43, %44 : vector<24x128xf32>
    %c0_44 = arith.constant 0 : index
    %c0_45 = arith.constant 0 : index
    %46 = vector.load %arg4[%c0_44, %c0_45] : memref<24x1xf32, #tpu.memory_space<vmem>>, vector<24x1xf32>
    %47 = vector.broadcast %46 : vector<24x1xf32> to vector<24x128xf32>
    %48 = arith.mulf %45, %47 : vector<24x128xf32>
    %c8_46 = arith.constant 8 : index
    %c0_47 = arith.constant 0 : index
    %49 = vector.load %arg22[%c8_46, %c0_47] : memref<40x128xf32, #tpu.memory_space<vmem>>, vector<24x128xf32>
    tpu.vector_store %arg22[%c8_46, %c0_47], %48 {strides = array<i32>} : memref<40x128xf32, #tpu.memory_space<vmem>>, vector<24x128xf32>,
    %cst_48 = arith.constant 0.000000e+00 : f32
    %50 = vector.broadcast %cst_48 : f32 to vector<24x256xf32>
    %c7_49 = arith.constant 7 : index
    %c0_50 = arith.constant 0 : index
    %51 = vector.load %arg22[%c7_49, %c0_50] : memref<40x128xf32, #tpu.memory_space<vmem>>, vector<24x128xf32>
    %52 = arith.truncf %51 : vector<24x128xf32> to vector<24x128xbf16>
    %c0_51 = arith.constant 0 : index
    %c0_52 = arith.constant 0 : index
    %c0_53 = arith.constant 0 : index
    %53 = vector.load %arg5[%c0_51, %c0_52, %c0_53] : memref<3x128x256xbf16, #tpu.memory_space<vmem>>, vector<1x128x256xbf16>
    %54 = vector.shape_cast %53 : vector<1x128x256xbf16> to vector<128x256xbf16>
    %cst_54 = arith.constant dense<0.000000e+00> : vector<24x256xf32>
    %55 = tpu.matmul %52, %54, %cst_54 {dimension_numbers = #tpu.dot_dimension_numbers<[1], [0], [0], [1], [0, 0, 1, 1], [], []>} : vector<24x128xbf16>, vector<128x256xbf16>, vector<24x256xf32> -> vector<24x256xf32>
    %56 = arith.addf %50, %55 : vector<24x256xf32>
    %c8_55 = arith.constant 8 : index
    %c0_56 = arith.constant 0 : index
    %57 = vector.load %arg22[%c8_55, %c0_56] : memref<40x128xf32, #tpu.memory_space<vmem>>, vector<24x128xf32>
    %58 = arith.truncf %57 : vector<24x128xf32> to vector<24x128xbf16>
    %c1_57 = arith.constant 1 : index
    %c0_58 = arith.constant 0 : index
    %c0_59 = arith.constant 0 : index
    %59 = vector.load %arg5[%c1_57, %c0_58, %c0_59] : memref<3x128x256xbf16, #tpu.memory_space<vmem>>, vector<1x128x256xbf16>
    %60 = vector.shape_cast %59 : vector<1x128x256xbf16> to vector<128x256xbf16>
    %cst_60 = arith.constant dense<0.000000e+00> : vector<24x256xf32>
    %61 = tpu.matmul %58, %60, %cst_60 {dimension_numbers = #tpu.dot_dimension_numbers<[1], [0], [0], [1], [0, 0, 1, 1], [], []>} : vector<24x128xbf16>, vector<128x256xbf16>, vector<24x256xf32> -> vector<24x256xf32>
    %62 = arith.addf %56, %61 : vector<24x256xf32>
    %c9_61 = arith.constant 9 : index
    %c0_62 = arith.constant 0 : index
    %63 = vector.load %arg22[%c9_61, %c0_62] : memref<40x128xf32, #tpu.memory_space<vmem>>, vector<24x128xf32>
    %64 = arith.truncf %63 : vector<24x128xf32> to vector<24x128xbf16>
    %c2_63 = arith.constant 2 : index
    %c0_64 = arith.constant 0 : index
    %c0_65 = arith.constant 0 : index
    %65 = vector.load %arg5[%c2_63, %c0_64, %c0_65] : memref<3x128x256xbf16, #tpu.memory_space<vmem>>, vector<1x128x256xbf16>
    %66 = vector.shape_cast %65 : vector<1x128x256xbf16> to vector<128x256xbf16>
    %cst_66 = arith.constant dense<0.000000e+00> : vector<24x256xf32>
    %67 = tpu.matmul %64, %66, %cst_66 {dimension_numbers = #tpu.dot_dimension_numbers<[1], [0], [0], [1], [0, 0, 1, 1], [], []>} : vector<24x128xbf16>, vector<128x256xbf16>, vector<24x256xf32> -> vector<24x256xf32>
    %68 = arith.addf %62, %67 : vector<24x256xf32>
    %c0_67 = arith.constant 0 : index
    %c0_68 = arith.constant 0 : index
    %69 = vector.load %arg6[%c0_67, %c0_68] : memref<1x256xf32, #tpu.memory_space<vmem>>, vector<1x256xf32>
    %70 = vector.broadcast %69 : vector<1x256xf32> to vector<24x256xf32>
    %71 = arith.addf %68, %70 : vector<24x256xf32>
    %72 = vector.extract_strided_slice %71 {offsets = [0, 0], sizes = [24, 128], strides = [1, 1]} : vector<24x256xf32> to vector<24x128xf32>
    %cst_69 = arith.constant 0.000000e+00 : f32
    %73 = vector.broadcast %cst_69 : f32 to vector<24x128xf32>
    %74 = arith.maximumf %72, %73 : vector<24x128xf32>
    %75 = vector.extract_strided_slice %71 {offsets = [0, 128], sizes = [24, 128], strides = [1, 1]} : vector<24x256xf32> to vector<24x128xf32>
    %cst_70 = arith.constant 5.000000e-02 : f32
    %76 = vector.broadcast %cst_70 : f32 to vector<24x128xf32>
    %77 = arith.mulf %76, %75 : vector<24x128xf32>
    %78 = arith.addf %74, %77 : vector<24x128xf32>
    %c0_71 = arith.constant 0 : index
    %c0_72 = arith.constant 0 : index
    %79 = vector.load %arg7[%c0_71, %c0_72] : memref<24x1xf32, #tpu.memory_space<vmem>>, vector<24x1xf32>
    %80 = vector.broadcast %79 : vector<24x1xf32> to vector<24x128xf32>
    %81 = arith.mulf %78, %80 : vector<24x128xf32>
    %c8_73 = arith.constant 8 : index
    %c0_74 = arith.constant 0 : index
    %82 = vector.load %arg23[%c8_73, %c0_74] : memref<40x128xf32, #tpu.memory_space<vmem>>, vector<24x128xf32>
    tpu.vector_store %arg23[%c8_73, %c0_74], %81 {strides = array<i32>} : memref<40x128xf32, #tpu.memory_space<vmem>>, vector<24x128xf32>,
    %cst_75 = arith.constant 0.000000e+00 : f32
    %83 = vector.broadcast %cst_75 : f32 to vector<12x256xf32>
    %c7_76 = arith.constant 7 : index
    %c0_77 = arith.constant 0 : index
    %84 = tpu.strided_load %arg23[%c7_76, %c0_77] {strides = array<i32: 2, 1>} : memref<40x128xf32, #tpu.memory_space<vmem>>, vector<12x128xf32>
    %85 = arith.truncf %84 : vector<12x128xf32> to vector<12x128xbf16>
    %c0_78 = arith.constant 0 : index
    %c0_79 = arith.constant 0 : index
    %c0_80 = arith.constant 0 : index
    %86 = vector.load %arg8[%c0_78, %c0_79, %c0_80] : memref<3x128x256xbf16, #tpu.memory_space<vmem>>, vector<1x128x256xbf16>
    %87 = vector.shape_cast %86 : vector<1x128x256xbf16> to vector<128x256xbf16>
    %cst_81 = arith.constant dense<0.000000e+00> : vector<12x256xf32>
    %88 = tpu.matmul %85, %87, %cst_81 {dimension_numbers = #tpu.dot_dimension_numbers<[1], [0], [0], [1], [0, 0, 1, 1], [], []>} : vector<12x128xbf16>, vector<128x256xbf16>, vector<12x256xf32> -> vector<12x256xf32>
    %89 = arith.addf %83, %88 : vector<12x256xf32>
    %c8_82 = arith.constant 8 : index
    %c0_83 = arith.constant 0 : index
    %90 = tpu.strided_load %arg23[%c8_82, %c0_83] {strides = array<i32: 2, 1>} : memref<40x128xf32, #tpu.memory_space<vmem>>, vector<12x128xf32>
    %91 = arith.truncf %90 : vector<12x128xf32> to vector<12x128xbf16>
    %c1_84 = arith.constant 1 : index
    %c0_85 = arith.constant 0 : index
    %c0_86 = arith.constant 0 : index
    %92 = vector.load %arg8[%c1_84, %c0_85, %c0_86] : memref<3x128x256xbf16, #tpu.memory_space<vmem>>, vector<1x128x256xbf16>
    %93 = vector.shape_cast %92 : vector<1x128x256xbf16> to vector<128x256xbf16>
    %cst_87 = arith.constant dense<0.000000e+00> : vector<12x256xf32>
    %94 = tpu.matmul %91, %93, %cst_87 {dimension_numbers = #tpu.dot_dimension_numbers<[1], [0], [0], [1], [0, 0, 1, 1], [], []>} : vector<12x128xbf16>, vector<128x256xbf16>, vector<12x256xf32> -> vector<12x256xf32>
    %95 = arith.addf %89, %94 : vector<12x256xf32>
    %c9_88 = arith.constant 9 : index
    %c0_89 = arith.constant 0 : index
    %96 = tpu.strided_load %arg23[%c9_88, %c0_89] {strides = array<i32: 2, 1>} : memref<40x128xf32, #tpu.memory_space<vmem>>, vector<12x128xf32>
    %97 = arith.truncf %96 : vector<12x128xf32> to vector<12x128xbf16>
    %c2_90 = arith.constant 2 : index
    %c0_91 = arith.constant 0 : index
    %c0_92 = arith.constant 0 : index
    %98 = vector.load %arg8[%c2_90, %c0_91, %c0_92] : memref<3x128x256xbf16, #tpu.memory_space<vmem>>, vector<1x128x256xbf16>
    %99 = vector.shape_cast %98 : vector<1x128x256xbf16> to vector<128x256xbf16>
    %cst_93 = arith.constant dense<0.000000e+00> : vector<12x256xf32>
    %100 = tpu.matmul %97, %99, %cst_93 {dimension_numbers = #tpu.dot_dimension_numbers<[1], [0], [0], [1], [0, 0, 1, 1], [], []>} : vector<12x128xbf16>, vector<128x256xbf16>, vector<12x256xf32> -> vector<12x256xf32>
    %101 = arith.addf %95, %100 : vector<12x256xf32>
    %c0_94 = arith.constant 0 : index
    %c0_95 = arith.constant 0 : index
    %102 = vector.load %arg9[%c0_94, %c0_95] : memref<1x256xf32, #tpu.memory_space<vmem>>, vector<1x256xf32>
    %103 = vector.broadcast %102 : vector<1x256xf32> to vector<12x256xf32>
    %104 = arith.addf %101, %103 : vector<12x256xf32>
    %105 = vector.extract_strided_slice %104 {offsets = [0, 0], sizes = [12, 128], strides = [1, 1]} : vector<12x256xf32> to vector<12x128xf32>
    %cst_96 = arith.constant 0.000000e+00 : f32
    %106 = vector.broadcast %cst_96 : f32 to vector<12x128xf32>
    %107 = arith.maximumf %105, %106 : vector<12x128xf32>
    %108 = vector.extract_strided_slice %104 {offsets = [0, 128], sizes = [12, 128], strides = [1, 1]} : vector<12x256xf32> to vector<12x128xf32>
    %cst_97 = arith.constant 5.000000e-02 : f32
    %109 = vector.broadcast %cst_97 : f32 to vector<12x128xf32>
    %110 = arith.mulf %109, %108 : vector<12x128xf32>
    %111 = arith.addf %107, %110 : vector<12x128xf32>
    %c0_98 = arith.constant 0 : index
    %c0_99 = arith.constant 0 : index
    %112 = vector.load %arg10[%c0_98, %c0_99] : memref<12x1xf32, #tpu.memory_space<vmem>>, vector<12x1xf32>
    %113 = vector.broadcast %112 : vector<12x1xf32> to vector<12x128xf32>
    %114 = arith.mulf %111, %113 : vector<12x128xf32>
    %c8_100 = arith.constant 8 : index
    %c0_101 = arith.constant 0 : index
    %115 = vector.load %arg24[%c8_100, %c0_101] : memref<28x128xf32, #tpu.memory_space<vmem>>, vector<12x128xf32>
    tpu.vector_store %arg24[%c8_100, %c0_101], %114 {strides = array<i32>} : memref<28x128xf32, #tpu.memory_space<vmem>>, vector<12x128xf32>,
    %cst_102 = arith.constant 0.000000e+00 : f32
    %116 = vector.broadcast %cst_102 : f32 to vector<6x256xf32>
    %c7_103 = arith.constant 7 : index
    %c0_104 = arith.constant 0 : index
    %117 = tpu.strided_load %arg24[%c7_103, %c0_104] {strides = array<i32: 2, 1>} : memref<28x128xf32, #tpu.memory_space<vmem>>, vector<6x128xf32>
    %118 = arith.truncf %117 : vector<6x128xf32> to vector<6x128xbf16>
    %c0_105 = arith.constant 0 : index
    %c0_106 = arith.constant 0 : index
    %c0_107 = arith.constant 0 : index
    %119 = vector.load %arg11[%c0_105, %c0_106, %c0_107] : memref<3x128x256xbf16, #tpu.memory_space<vmem>>, vector<1x128x256xbf16>
    %120 = vector.shape_cast %119 : vector<1x128x256xbf16> to vector<128x256xbf16>
    %cst_108 = arith.constant dense<0.000000e+00> : vector<6x256xf32>
    %121 = tpu.matmul %118, %120, %cst_108 {dimension_numbers = #tpu.dot_dimension_numbers<[1], [0], [0], [1], [0, 0, 1, 1], [], []>} : vector<6x128xbf16>, vector<128x256xbf16>, vector<6x256xf32> -> vector<6x256xf32>
    %122 = arith.addf %116, %121 : vector<6x256xf32>
    %c8_109 = arith.constant 8 : index
    %c0_110 = arith.constant 0 : index
    %123 = tpu.strided_load %arg24[%c8_109, %c0_110] {strides = array<i32: 2, 1>} : memref<28x128xf32, #tpu.memory_space<vmem>>, vector<6x128xf32>
    %124 = arith.truncf %123 : vector<6x128xf32> to vector<6x128xbf16>
    %c1_111 = arith.constant 1 : index
    %c0_112 = arith.constant 0 : index
    %c0_113 = arith.constant 0 : index
    %125 = vector.load %arg11[%c1_111, %c0_112, %c0_113] : memref<3x128x256xbf16, #tpu.memory_space<vmem>>, vector<1x128x256xbf16>
    %126 = vector.shape_cast %125 : vector<1x128x256xbf16> to vector<128x256xbf16>
    %cst_114 = arith.constant dense<0.000000e+00> : vector<6x256xf32>
    %127 = tpu.matmul %124, %126, %cst_114 {dimension_numbers = #tpu.dot_dimension_numbers<[1], [0], [0], [1], [0, 0, 1, 1], [], []>} : vector<6x128xbf16>, vector<128x256xbf16>, vector<6x256xf32> -> vector<6x256xf32>
    %128 = arith.addf %122, %127 : vector<6x256xf32>
    %c9_115 = arith.constant 9 : index
    %c0_116 = arith.constant 0 : index
    %129 = tpu.strided_load %arg24[%c9_115, %c0_116] {strides = array<i32: 2, 1>} : memref<28x128xf32, #tpu.memory_space<vmem>>, vector<6x128xf32>
    %130 = arith.truncf %129 : vector<6x128xf32> to vector<6x128xbf16>
    %c2_117 = arith.constant 2 : index
    %c0_118 = arith.constant 0 : index
    %c0_119 = arith.constant 0 : index
    %131 = vector.load %arg11[%c2_117, %c0_118, %c0_119] : memref<3x128x256xbf16, #tpu.memory_space<vmem>>, vector<1x128x256xbf16>
    %132 = vector.shape_cast %131 : vector<1x128x256xbf16> to vector<128x256xbf16>
    %cst_120 = arith.constant dense<0.000000e+00> : vector<6x256xf32>
    %133 = tpu.matmul %130, %132, %cst_120 {dimension_numbers = #tpu.dot_dimension_numbers<[1], [0], [0], [1], [0, 0, 1, 1], [], []>} : vector<6x128xbf16>, vector<128x256xbf16>, vector<6x256xf32> -> vector<6x256xf32>
    %134 = arith.addf %128, %133 : vector<6x256xf32>
    %c0_121 = arith.constant 0 : index
    %c0_122 = arith.constant 0 : index
    %135 = vector.load %arg12[%c0_121, %c0_122] : memref<1x256xf32, #tpu.memory_space<vmem>>, vector<1x256xf32>
    %136 = vector.broadcast %135 : vector<1x256xf32> to vector<6x256xf32>
    %137 = arith.addf %134, %136 : vector<6x256xf32>
    %138 = vector.extract_strided_slice %137 {offsets = [0, 0], sizes = [6, 128], strides = [1, 1]} : vector<6x256xf32> to vector<6x128xf32>
    %cst_123 = arith.constant 0.000000e+00 : f32
    %139 = vector.broadcast %cst_123 : f32 to vector<6x128xf32>
    %140 = arith.maximumf %138, %139 : vector<6x128xf32>
    %141 = vector.extract_strided_slice %137 {offsets = [0, 128], sizes = [6, 128], strides = [1, 1]} : vector<6x256xf32> to vector<6x128xf32>
    %cst_124 = arith.constant 5.000000e-02 : f32
    %142 = vector.broadcast %cst_124 : f32 to vector<6x128xf32>
    %143 = arith.mulf %142, %141 : vector<6x128xf32>
    %144 = arith.addf %140, %143 : vector<6x128xf32>
    %c0_125 = arith.constant 0 : index
    %c0_126 = arith.constant 0 : index
    %145 = vector.load %arg13[%c0_125, %c0_126] : memref<6x1xf32, #tpu.memory_space<vmem>>, vector<6x1xf32>
    %146 = vector.broadcast %145 : vector<6x1xf32> to vector<6x128xf32>
    %147 = arith.mulf %144, %146 : vector<6x128xf32>
    %c8_127 = arith.constant 8 : index
    %c0_128 = arith.constant 0 : index
    %148 = vector.load %arg25[%c8_127, %c0_128] : memref<22x128xf32, #tpu.memory_space<vmem>>, vector<6x128xf32>
    tpu.vector_store %arg25[%c8_127, %c0_128], %147 {strides = array<i32>} : memref<22x128xf32, #tpu.memory_space<vmem>>, vector<6x128xf32>,
    %cst_129 = arith.constant 0.000000e+00 : f32
    %149 = vector.broadcast %cst_129 : f32 to vector<3x256xf32>
    %c7_130 = arith.constant 7 : index
    %c0_131 = arith.constant 0 : index
    %150 = tpu.strided_load %arg25[%c7_130, %c0_131] {strides = array<i32: 2, 1>} : memref<22x128xf32, #tpu.memory_space<vmem>>, vector<3x128xf32>
    %151 = arith.truncf %150 : vector<3x128xf32> to vector<3x128xbf16>
    %c0_132 = arith.constant 0 : index
    %c0_133 = arith.constant 0 : index
    %c0_134 = arith.constant 0 : index
    %152 = vector.load %arg14[%c0_132, %c0_133, %c0_134] : memref<3x128x256xbf16, #tpu.memory_space<vmem>>, vector<1x128x256xbf16>
    %153 = vector.shape_cast %152 : vector<1x128x256xbf16> to vector<128x256xbf16>
    %cst_135 = arith.constant dense<0.000000e+00> : vector<3x256xf32>
    %154 = tpu.matmul %151, %153, %cst_135 {dimension_numbers = #tpu.dot_dimension_numbers<[1], [0], [0], [1], [0, 0, 1, 1], [], []>} : vector<3x128xbf16>, vector<128x256xbf16>, vector<3x256xf32> -> vector<3x256xf32>
    %155 = arith.addf %149, %154 : vector<3x256xf32>
    %c8_136 = arith.constant 8 : index
    %c0_137 = arith.constant 0 : index
    %156 = tpu.strided_load %arg25[%c8_136, %c0_137] {strides = array<i32: 2, 1>} : memref<22x128xf32, #tpu.memory_space<vmem>>, vector<3x128xf32>
    %157 = arith.truncf %156 : vector<3x128xf32> to vector<3x128xbf16>
    %c1_138 = arith.constant 1 : index
    %c0_139 = arith.constant 0 : index
    %c0_140 = arith.constant 0 : index
    %158 = vector.load %arg14[%c1_138, %c0_139, %c0_140] : memref<3x128x256xbf16, #tpu.memory_space<vmem>>, vector<1x128x256xbf16>
    %159 = vector.shape_cast %158 : vector<1x128x256xbf16> to vector<128x256xbf16>
    %cst_141 = arith.constant dense<0.000000e+00> : vector<3x256xf32>
    %160 = tpu.matmul %157, %159, %cst_141 {dimension_numbers = #tpu.dot_dimension_numbers<[1], [0], [0], [1], [0, 0, 1, 1], [], []>} : vector<3x128xbf16>, vector<128x256xbf16>, vector<3x256xf32> -> vector<3x256xf32>
    %161 = arith.addf %155, %160 : vector<3x256xf32>
    %c9_142 = arith.constant 9 : index
    %c0_143 = arith.constant 0 : index
    %162 = tpu.strided_load %arg25[%c9_142, %c0_143] {strides = array<i32: 2, 1>} : memref<22x128xf32, #tpu.memory_space<vmem>>, vector<3x128xf32>
    %163 = arith.truncf %162 : vector<3x128xf32> to vector<3x128xbf16>
    %c2_144 = arith.constant 2 : index
    %c0_145 = arith.constant 0 : index
    %c0_146 = arith.constant 0 : index
    %164 = vector.load %arg14[%c2_144, %c0_145, %c0_146] : memref<3x128x256xbf16, #tpu.memory_space<vmem>>, vector<1x128x256xbf16>
    %165 = vector.shape_cast %164 : vector<1x128x256xbf16> to vector<128x256xbf16>
    %cst_147 = arith.constant dense<0.000000e+00> : vector<3x256xf32>
    %166 = tpu.matmul %163, %165, %cst_147 {dimension_numbers = #tpu.dot_dimension_numbers<[1], [0], [0], [1], [0, 0, 1, 1], [], []>} : vector<3x128xbf16>, vector<128x256xbf16>, vector<3x256xf32> -> vector<3x256xf32>
    %167 = arith.addf %161, %166 : vector<3x256xf32>
    %c0_148 = arith.constant 0 : index
    %c0_149 = arith.constant 0 : index
    %168 = vector.load %arg15[%c0_148, %c0_149] : memref<1x256xf32, #tpu.memory_space<vmem>>, vector<1x256xf32>
    %169 = vector.broadcast %168 : vector<1x256xf32> to vector<3x256xf32>
    %170 = arith.addf %167, %169 : vector<3x256xf32>
    %171 = vector.extract_strided_slice %170 {offsets = [0, 0], sizes = [3, 128], strides = [1, 1]} : vector<3x256xf32> to vector<3x128xf32>
    %cst_150 = arith.constant 0.000000e+00 : f32
    %172 = vector.broadcast %cst_150 : f32 to vector<3x128xf32>
    %173 = arith.maximumf %171, %172 : vector<3x128xf32>
    %174 = vector.extract_strided_slice %170 {offsets = [0, 128], sizes = [3, 128], strides = [1, 1]} : vector<3x256xf32> to vector<3x128xf32>
    %cst_151 = arith.constant 5.000000e-02 : f32
    %175 = vector.broadcast %cst_151 : f32 to vector<3x128xf32>
    %176 = arith.mulf %175, %174 : vector<3x128xf32>
    %177 = arith.addf %173, %176 : vector<3x128xf32>
    %c0_152 = arith.constant 0 : index
    %c0_153 = arith.constant 0 : index
    %178 = vector.load %arg16[%c0_152, %c0_153] : memref<3x1xf32, #tpu.memory_space<vmem>>, vector<3x1xf32>
    %179 = vector.broadcast %178 : vector<3x1xf32> to vector<3x128xf32>
    %180 = arith.mulf %177, %179 : vector<3x128xf32>
    %181 = arith.truncf %180 : vector<3x128xf32> to vector<3x128xbf16>
    %c0_154 = arith.constant 0 : index
    %c0_155 = arith.constant 0 : index
    %182 = vector.load %arg26[%c0_154, %c0_155] : memref<3x128xbf16, #tpu.memory_space<vmem>>, vector<3x128xbf16>
    tpu.vector_store %arg26[%c0_154, %c0_155], %181 {strides = array<i32>} : memref<3x128xbf16, #tpu.memory_space<vmem>>, vector<3x128xbf16>,
    %c0_156 = arith.constant 0 : index
    %c0_157 = arith.constant 0 : index
    %183 = vector.load %arg17[%c0_156, %c0_157] : memref<1x3xbf16, #tpu.memory_space<vmem>>, vector<1x3xbf16>
    %c0_158 = arith.constant 0 : index
    %c0_159 = arith.constant 0 : index
    %184 = vector.load %arg26[%c0_158, %c0_159] : memref<3x128xbf16, #tpu.memory_space<vmem>>, vector<3x128xbf16>
    %cst_160 = arith.constant dense<0.000000e+00> : vector<1x128xf32>
    %185 = tpu.matmul %183, %184, %cst_160 {dimension_numbers = #tpu.dot_dimension_numbers<[1], [0], [0], [1], [0, 0, 1, 1], [], []>} : vector<1x3xbf16>, vector<3x128xbf16>, vector<1x128xf32> -> vector<1x128xf32>
    %186 = arith.truncf %185 : vector<1x128xf32> to vector<1x128xbf16>
    %c0_161 = arith.constant 0 : index
    %c0_162 = arith.constant 0 : index
    %187 = vector.load %arg18[%c0_161, %c0_162] : memref<128x128xbf16, #tpu.memory_space<vmem>>, vector<128x128xbf16>
    %cst_163 = arith.constant dense<0.000000e+00> : vector<1x128xf32>
    %188 = tpu.matmul %186, %187, %cst_163 {dimension_numbers = #tpu.dot_dimension_numbers<[1], [0], [0], [1], [0, 0, 1, 1], [], []>} : vector<1x128xbf16>, vector<128x128xbf16>, vector<1x128xf32> -> vector<1x128xf32>
    %c0_164 = arith.constant 0 : index
    %c0_165 = arith.constant 0 : index
    %189 = vector.load %arg19[%c0_164, %c0_165] : memref<1x128xf32, #tpu.memory_space<vmem>>, vector<1x128xf32>
    %190 = arith.addf %188, %189 : vector<1x128xf32>
    %c0_166 = arith.constant 0 : index
    %c0_167 = arith.constant 0 : index
    %c0_168 = arith.constant 0 : index
    %191 = vector.load %arg20[%c0_166, %c0_167, %c0_168] : memref<1x1x128xf32, #tpu.memory_space<vmem>>, vector<1x1x128xf32>
    %192 = vector.shape_cast %191 : vector<1x1x128xf32> to vector<1x128xf32>
    %193 = vector.shape_cast %190 : vector<1x128xf32> to vector<1x1x128xf32>
    tpu.vector_store %arg20[%c0_166, %c0_167, %c0_168], %193 {strides = array<i32>} : memref<1x1x128xf32, #tpu.memory_space<vmem>>, vector<1x1x128xf32>,
    return
  }
  func.func @transform_0(%arg0: i32) -> (i32, i32, i32) {
    %c0_i32 = arith.constant 0 : i32
    %c0_i32_0 = arith.constant 0 : i32
    %c0_i32_1 = arith.constant 0 : i32
    return %arg0, %c0_i32, %c0_i32_0 : i32, i32, i32
  }
  func.func @transform_1(%arg0: i32) -> (i32, i32, i32) {
    %c0_i32 = arith.constant 0 : i32
    %c0_i32_0 = arith.constant 0 : i32
    %c0_i32_1 = arith.constant 0 : i32
    %c0_i32_2 = arith.constant 0 : i32
    return %c0_i32, %c0_i32_0, %c0_i32_1 : i32, i32, i32
  }
  func.func @transform_2(%arg0: i32) -> (i32, i32) {
    %c0_i32 = arith.constant 0 : i32
    %c0_i32_0 = arith.constant 0 : i32
    %c0_i32_1 = arith.constant 0 : i32
    return %c0_i32, %c0_i32_0 : i32, i32
  }
  func.func @transform_3(%arg0: i32) -> (i32, i32) {
    %c0_i32 = arith.constant 0 : i32
    %c0_i32_0 = arith.constant 0 : i32
    %c0_i32_1 = arith.constant 0 : i32
    return %c0_i32, %c0_i32_0 : i32, i32
  }
  func.func @transform_4(%arg0: i32) -> (i32, i32, i32) {
    %c0_i32 = arith.constant 0 : i32
    %c0_i32_0 = arith.constant 0 : i32
    %c0_i32_1 = arith.constant 0 : i32
    %c0_i32_2 = arith.constant 0 : i32
    return %c0_i32, %c0_i32_0, %c0_i32_1 : i32, i32, i32
  }
  func.func @transform_5(%arg0: i32) -> (i32, i32) {
    %c0_i32 = arith.constant 0 : i32
    %c0_i32_0 = arith.constant 0 : i32
    %c0_i32_1 = arith.constant 0 : i32
    return %c0_i32, %c0_i32_0 : i32, i32
  }
  func.func @transform_6(%arg0: i32) -> (i32, i32) {
    %c0_i32 = arith.constant 0 : i32
    %c0_i32_0 = arith.constant 0 : i32
    %c0_i32_1 = arith.constant 0 : i32
    return %c0_i32, %c0_i32_0 : i32, i32
  }
  func.func @transform_7(%arg0: i32) -> (i32, i32, i32) {
    %c0_i32 = arith.constant 0 : i32
    %c0_i32_0 = arith.constant 0 : i32
    %c0_i32_1 = arith.constant 0 : i32
    %c0_i32_2 = arith.constant 0 : i32
    return %c0_i32, %c0_i32_0, %c0_i32_1 : i32, i32, i32
  }
  func.func @transform_8(%arg0: i32) -> (i32, i32) {
    %c0_i32 = arith.constant 0 : i32
    %c0_i32_0 = arith.constant 0 : i32
    %c0_i32_1 = arith.constant 0 : i32
    return %c0_i32, %c0_i32_0 : i32, i32
  }
  func.func @transform_9(%arg0: i32) -> (i32, i32) {
    %c0_i32 = arith.constant 0 : i32
    %c0_i32_0 = arith.constant 0 : i32
    %c0_i32_1 = arith.constant 0 : i32
    return %c0_i32, %c0_i32_0 : i32, i32
  }
  func.func @transform_10(%arg0: i32) -> (i32, i32, i32) {
    %c0_i32 = arith.constant 0 : i32
    %c0_i32_0 = arith.constant 0 : i32
    %c0_i32_1 = arith.constant 0 : i32
    %c0_i32_2 = arith.constant 0 : i32
    return %c0_i32, %c0_i32_0, %c0_i32_1 : i32, i32, i32
  }
  func.func @transform_11(%arg0: i32) -> (i32, i32) {
    %c0_i32 = arith.constant 0 : i32
    %c0_i32_0 = arith.constant 0 : i32
    %c0_i32_1 = arith.constant 0 : i32
    return %c0_i32, %c0_i32_0 : i32, i32
  }
  func.func @transform_12(%arg0: i32) -> (i32, i32) {
    %c0_i32 = arith.constant 0 : i32
    %c0_i32_0 = arith.constant 0 : i32
    %c0_i32_1 = arith.constant 0 : i32
    return %c0_i32, %c0_i32_0 : i32, i32
  }
  func.func @transform_13(%arg0: i32) -> (i32, i32, i32) {
    %c0_i32 = arith.constant 0 : i32
    %c0_i32_0 = arith.constant 0 : i32
    %c0_i32_1 = arith.constant 0 : i32
    %c0_i32_2 = arith.constant 0 : i32
    return %c0_i32, %c0_i32_0, %c0_i32_1 : i32, i32, i32
  }
  func.func @transform_14(%arg0: i32) -> (i32, i32) {
    %c0_i32 = arith.constant 0 : i32
    %c0_i32_0 = arith.constant 0 : i32
    %c0_i32_1 = arith.constant 0 : i32
    return %c0_i32, %c0_i32_0 : i32, i32
  }
  func.func @transform_15(%arg0: i32) -> (i32, i32) {
    %c0_i32 = arith.constant 0 : i32
    %c0_i32_0 = arith.constant 0 : i32
    %c0_i32_1 = arith.constant 0 : i32
    return %c0_i32, %c0_i32_0 : i32, i32
  }
  func.func @transform_16(%arg0: i32) -> (i32, i32) {
    %c0_i32 = arith.constant 0 : i32
    %c0_i32_0 = arith.constant 0 : i32
    %c0_i32_1 = arith.constant 0 : i32
    return %c0_i32, %c0_i32_0 : i32, i32
  }
  func.func @transform_17(%arg0: i32) -> (i32, i32) {
    %c0_i32 = arith.constant 0 : i32
    %c0_i32_0 = arith.constant 0 : i32
    %c0_i32_1 = arith.constant 0 : i32
    return %c0_i32, %c0_i32_0 : i32, i32
  }
  func.func @transform_18(%arg0: i32) -> (i32, i32) {
    %c0_i32 = arith.constant 0 : i32
    %c0_i32_0 = arith.constant 0 : i32
    %c0_i32_1 = arith.constant 0 : i32
    return %c0_i32, %c0_i32_0 : i32, i32
  }
  func.func @transform_19(%arg0: i32) -> (i32, i32, i32) {
    %c0_i32 = arith.constant 0 : i32
    %c0_i32_0 = arith.constant 0 : i32
    %c0_i32_1 = arith.constant 0 : i32
    return %arg0, %c0_i32, %c0_i32_0 : i32, i32, i32
  }
}

</mosaic_0001>

<bundles_post_ra>
// kernel: tile.53
= control target key start
LH: loop header
LB: loop body
LE: loop exit
PB: predicated region body
PF: predicated region fallthrough
CT: control target
= control target key end

     0   :  { %s28_s0 = inlined_call_operand.vmem [shape: f32[8], index: 0, kind: input, shape index: {}]   ;;  %s29_s1 = inlined_call_operand.vmem [shape: f32[16,8], index: 1, kind: output, shape index: {}]  }
   0x1   :  { %v4_v0 = vld [vmem:[%s28_s0] ss:$0 sm:$0xff] }
   0x2   :  { %5 = vst [vmem:[%s29_s1] sm:$0xff] %v4_v0  ;;  %8 = vst [vmem:[%s29_s1 + $0x8] sm:$0xff] %v4_v0 }

// kernel: tile.54
= control target key start
LH: loop header
LB: loop body
LE: loop exit
PB: predicated region body
PF: predicated region fallthrough
CT: control target
= control target key end

     0   :  { %s133_s10 = smov 120   ;;  %s134_s11 = smov 104   ;;  %vm3_vm0 = vcmask 64512   ;;  %vm9_vm1 = vcmask 1048512   ;;  %vm15_vm2 = vcmask 982912   ;;  %vm21_vm3 = vcmask 917312   ;;  %s209_s0 = inlined_call_operand.vmem [shape: f32[16,8], index: 0, kind: input, shape index: {}]   ;;  %s210_s1 = inlined_call_operand.vmem [shape: f32[1,128], index: 1, kind: output, shape index: {}]  }
   0x1   :  { %v103_v0 = vld [vmem:[%s209_s0 + $0xf] sm:$0x1]   ;;  %v105_v1 = vld [vmem:[%s209_s0 + $0xd] sm:$0x1]   ;;  %v104_v2 = vld [vmem:[%s209_s0 + $0xe] sm:$0x1]  }
   0x2   :  { %7 = vrot.lane.b32.xlu0 %v103_v0, %s133_s10  ;;  %19 = vrot.lane.b32.xlu1 %v105_v1, %s134_s11  ;;  %v106_v3 = vld [vmem:[%s209_s0 + $0xc] sm:$0x1]   ;;  %s135_s16 = smov 112   ;;  %s136_s17 = smov 96   ;;  %v107_v4 = vld [vmem:[%s209_s0 + $0xb] sm:$0x1]  }
   0x3   :  { %v108_v5 = vld [vmem:[%s209_s0 + $0xa] sm:$0x1]   ;;  %v2_v6 = vld [vmem:[%s209_s0] sm:$0x1]   ;;  %s137_s24 = smov 88   ;;  %s138_s25 = smov 80  }
   0x4   :  { %4 = vst.msk [vmem:[#allocation0] sm:$0x1] %vm3_vm0, %v2_v6   ;;  %v109_v7 = vld [vmem:[%s209_s0 + $0x9] sm:$0x1]   ;;  %v110_v8 = vld [vmem:[%s209_s0 + $0x8] sm:$0x1]  }
   0x5   :  { %s139_s30 = smov 72   ;;  %s140_s2 = smov 64   ;;  %v111_v9 = vld [vmem:[%s209_s0 + $0x7] sm:$0x1]   ;;  %v112_v10 = vld [vmem:[%s209_s0 + $0x6] sm:$0x1]  }
   0x6   :  { %13 = vrot.lane.b32.xlu0 %v104_v2, %s135_s16  ;;  %25 = vrot.lane.b32.xlu1 %v106_v3, %s136_s17  ;;  %s141_s7 = smov 56   ;;  %s142_s8 = smov 48   ;;  %v113_v11 = vld [vmem:[%s209_s0 + $0x5] sm:$0x1]   ;;  %v114_v12 = vld [vmem:[%s209_s0 + $0x4] sm:$0x1]  }
   0x7   :  { %s143_s13 = smov 40   ;;  %s144_s14 = smov 32   ;;  %v115_v13 = vld [vmem:[%s209_s0 + $0x3] sm:$0x1]   ;;  %v116_v14 = vld [vmem:[%s209_s0 + $0x2] sm:$0x1]  }
   0x8   :  { %s145_s19 = smov 24   ;;  %s146_s20 = smov 16   ;;  %v117_v15 = vld [vmem:[%s209_s0 + $0x1] sm:$0x1]   ;;  %vm27_vm4 = vcmask 851712   ;;  %vm33_vm5 = vcmask 786112  }
   0x9   :  { %s147_s0 = smov 8   ;;  %vm39_vm6 = vcmask 720512   ;;  %vm45_vm7 = vcmask 654912   ;;  %vm51_vm8 = vcmask 589312   ;;  %vm57_vm9 = vcmask 523712  }
   0xa   :  { %31 = vrot.lane.b32.xlu0 %v107_v4, %s137_s24  ;;  %37 = vrot.lane.b32.xlu1 %v108_v5, %s138_s25  ;;  %vm63_vm10 = vcmask 458112   ;;  %vm69_vm11 = vcmask 392512   ;;  %vm75_vm12 = vcmask 326912   ;;  %vm81_vm13 = vcmask 261312  }
   0xb   :  { %vm87_vm14 = vcmask 195712   ;;  %vm93_vm15 = vcmask 130112  }
   0xe   :  { %43 = vrot.lane.b32.xlu0 %v109_v7, %s139_s30  ;;  %49 = vrot.lane.b32.xlu1 %v110_v8, %s140_s2 }
  0x12   :  { %55 = vrot.lane.b32.xlu0 %v111_v9, %s141_s7  ;;  %61 = vrot.lane.b32.xlu1 %v112_v10, %s142_s8 }
  0x16   :  { %67 = vrot.lane.b32.xlu0 %v113_v11, %s143_s13  ;;  %73 = vrot.lane.b32.xlu1 %v114_v12, %s144_s14 }
  0x1a   :  { %79 = vrot.lane.b32.xlu0 %v115_v13, %s145_s19  ;;  %85 = vrot.lane.b32.xlu1 %v116_v14, %s146_s20 }
  0x1e   :  { %91 = vrot.lane.b32.xlu0 %v117_v15, %s147_s0 }
  0x74   :  { %v8_v16 = vpop.permute.xlu0 %7   ;;  %v20_v17 = vpop.permute.xlu1 %19  }
  0x75   :  { %10 = vst.msk [vmem:[#allocation0] sm:$0x1] %vm9_vm1, %v8_v16  }
  0x78   :  { %v14_v18 = vpop.permute.xlu0 %13   ;;  %v26_v19 = vpop.permute.xlu1 %25  }
  0x79   :  { %16 = vst.msk [vmem:[#allocation0] sm:$0x1] %vm15_vm2, %v14_v18  }
  0x7a   :  { %22 = vst.msk [vmem:[#allocation0] sm:$0x1] %vm21_vm3, %v20_v17  }
  0x7b   :  { %28 = vst.msk [vmem:[#allocation0] sm:$0x1] %vm27_vm4, %v26_v19  }
  0x7c   :  { %v32_v20 = vpop.permute.xlu0 %31   ;;  %v38_v21 = vpop.permute.xlu1 %37  }
  0x7d   :  { %34 = vst.msk [vmem:[#allocation0] sm:$0x1] %vm33_vm5, %v32_v20  }
  0x7e   :  { %40 = vst.msk [vmem:[#allocation0] sm:$0x1] %vm39_vm6, %v38_v21  }
  0x80   :  { %v44_v22 = vpop.permute.xlu0 %43   ;;  %v50_v23 = vpop.permute.xlu1 %49  }
  0x81   :  { %46 = vst.msk [vmem:[#allocation0] sm:$0x1] %vm45_vm7, %v44_v22  }
  0x82   :  { %52 = vst.msk [vmem:[#allocation0] sm:$0x1] %vm51_vm8, %v50_v23  }
  0x84   :  { %v56_v24 = vpop.permute.xlu0 %55   ;;  %v62_v25 = vpop.permute.xlu1 %61  }
  0x85   :  { %58 = vst.msk [vmem:[#allocation0] sm:$0x1] %vm57_vm9, %v56_v24  }
  0x86   :  { %64 = vst.msk [vmem:[#allocation0] sm:$0x1] %vm63_vm10, %v62_v25  }
  0x88   :  { %v68_v26 = vpop.permute.xlu0 %67   ;;  %v74_v27 = vpop.permute.xlu1 %73  }
  0x89   :  { %70 = vst.msk [vmem:[#allocation0] sm:$0x1] %vm69_vm11, %v68_v26  }
  0x8a   :  { %76 = vst.msk [vmem:[#allocation0] sm:$0x1] %vm75_vm12, %v74_v27  }
  0x8c   :  { %v80_v28 = vpop.permute.xlu0 %79   ;;  %v86_v29 = vpop.permute.xlu1 %85  }
  0x8d   :  { %82 = vst.msk [vmem:[#allocation0] sm:$0x1] %vm81_vm13, %v80_v28  }
  0x8e   :  { %88 = vst.msk [vmem:[#allocation0] sm:$0x1] %vm87_vm14, %v86_v29  }
  0x90   :  { %v92_v30 = vpop.permute.xlu0 %91  }
  0x91   :  { %94 = vst.msk [vmem:[#allocation0] sm:$0x1] %vm93_vm15, %v92_v30  }
  0x98   :  { %v99_v31 = vld [vmem:[#allocation0] sm:$0x1] }
  0x99   :  { %102 = vst [vmem:[%s210_s1] sm:$0x1] %v99_v31 }

// kernel: tile.64
= control target key start
LH: loop header
LB: loop body
LE: loop exit
PB: predicated region body
PF: predicated region fallthrough
CT: control target
= control target key end

     0   :  { %s133_s10 = smov 120   ;;  %s134_s11 = smov 104   ;;  %vm3_vm0 = vcmask 64512   ;;  %vm9_vm1 = vcmask 1048512   ;;  %vm15_vm2 = vcmask 982912   ;;  %vm21_vm3 = vcmask 917312   ;;  %s209_s0 = inlined_call_operand.vmem [shape: f32[16,8], index: 0, kind: input, shape index: {}]   ;;  %s210_s1 = inlined_call_operand.vmem [shape: f32[128], index: 1, kind: output, shape index: {}]  }
   0x1   :  { %v103_v0 = vld [vmem:[%s209_s0 + $0xf] sm:$0x1]   ;;  %v105_v1 = vld [vmem:[%s209_s0 + $0xd] sm:$0x1]   ;;  %v104_v2 = vld [vmem:[%s209_s0 + $0xe] sm:$0x1]  }
   0x2   :  { %7 = vrot.lane.b32.xlu0 %v103_v0, %s133_s10  ;;  %19 = vrot.lane.b32.xlu1 %v105_v1, %s134_s11  ;;  %v106_v3 = vld [vmem:[%s209_s0 + $0xc] sm:$0x1]   ;;  %s135_s16 = smov 112   ;;  %s136_s17 = smov 96   ;;  %v107_v4 = vld [vmem:[%s209_s0 + $0xb] sm:$0x1]  }
   0x3   :  { %v108_v5 = vld [vmem:[%s209_s0 + $0xa] sm:$0x1]   ;;  %v2_v6 = vld [vmem:[%s209_s0] sm:$0x1]   ;;  %s137_s24 = smov 88   ;;  %s138_s25 = smov 80  }
   0x4   :  { %4 = vst.msk [vmem:[#allocation0] sm:$0x1] %vm3_vm0, %v2_v6   ;;  %v109_v7 = vld [vmem:[%s209_s0 + $0x9] sm:$0x1]   ;;  %v110_v8 = vld [vmem:[%s209_s0 + $0x8] sm:$0x1]  }
   0x5   :  { %s139_s30 = smov 72   ;;  %s140_s2 = smov 64   ;;  %v111_v9 = vld [vmem:[%s209_s0 + $0x7] sm:$0x1]   ;;  %v112_v10 = vld [vmem:[%s209_s0 + $0x6] sm:$0x1]  }
   0x6   :  { %13 = vrot.lane.b32.xlu0 %v104_v2, %s135_s16  ;;  %25 = vrot.lane.b32.xlu1 %v106_v3, %s136_s17  ;;  %s141_s7 = smov 56   ;;  %s142_s8 = smov 48   ;;  %v113_v11 = vld [vmem:[%s209_s0 + $0x5] sm:$0x1]   ;;  %v114_v12 = vld [vmem:[%s209_s0 + $0x4] sm:$0x1]  }
   0x7   :  { %s143_s13 = smov 40   ;;  %s144_s14 = smov 32   ;;  %v115_v13 = vld [vmem:[%s209_s0 + $0x3] sm:$0x1]   ;;  %v116_v14 = vld [vmem:[%s209_s0 + $0x2] sm:$0x1]  }
   0x8   :  { %s145_s19 = smov 24   ;;  %s146_s20 = smov 16   ;;  %v117_v15 = vld [vmem:[%s209_s0 + $0x1] sm:$0x1]   ;;  %vm27_vm4 = vcmask 851712   ;;  %vm33_vm5 = vcmask 786112  }
   0x9   :  { %s147_s0 = smov 8   ;;  %vm39_vm6 = vcmask 720512   ;;  %vm45_vm7 = vcmask 654912   ;;  %vm51_vm8 = vcmask 589312   ;;  %vm57_vm9 = vcmask 523712  }
   0xa   :  { %31 = vrot.lane.b32.xlu0 %v107_v4, %s137_s24  ;;  %37 = vrot.lane.b32.xlu1 %v108_v5, %s138_s25  ;;  %vm63_vm10 = vcmask 458112   ;;  %vm69_vm11 = vcmask 392512   ;;  %vm75_vm12 = vcmask 326912   ;;  %vm81_vm13 = vcmask 261312  }
   0xb   :  { %vm87_vm14 = vcmask 195712   ;;  %vm93_vm15 = vcmask 130112  }
   0xe   :  { %43 = vrot.lane.b32.xlu0 %v109_v7, %s139_s30  ;;  %49 = vrot.lane.b32.xlu1 %v110_v8, %s140_s2 }
  0x12   :  { %55 = vrot.lane.b32.xlu0 %v111_v9, %s141_s7  ;;  %61 = vrot.lane.b32.xlu1 %v112_v10, %s142_s8 }
  0x16   :  { %67 = vrot.lane.b32.xlu0 %v113_v11, %s143_s13  ;;  %73 = vrot.lane.b32.xlu1 %v114_v12, %s144_s14 }
  0x1a   :  { %79 = vrot.lane.b32.xlu0 %v115_v13, %s145_s19  ;;  %85 = vrot.lane.b32.xlu1 %v116_v14, %s146_s20 }
  0x1e   :  { %91 = vrot.lane.b32.xlu0 %v117_v15, %s147_s0 }
  0x74   :  { %v8_v16 = vpop.permute.xlu0 %7   ;;  %v20_v17 = vpop.permute.xlu1 %19  }
  0x75   :  { %10 = vst.msk [vmem:[#allocation0] sm:$0x1] %vm9_vm1, %v8_v16  }
  0x78   :  { %v14_v18 = vpop.permute.xlu0 %13   ;;  %v26_v19 = vpop.permute.xlu1 %25  }
  0x79   :  { %16 = vst.msk [vmem:[#allocation0] sm:$0x1] %vm15_vm2, %v14_v18  }
  0x7a   :  { %22 = vst.msk [vmem:[#allocation0] sm:$0x1] %vm21_vm3, %v20_v17  }
  0x7b   :  { %28 = vst.msk [vmem:[#allocation0] sm:$0x1] %vm27_vm4, %v26_v19  }
  0x7c   :  { %v32_v20 = vpop.permute.xlu0 %31   ;;  %v38_v21 = vpop.permute.xlu1 %37  }
  0x7d   :  { %34 = vst.msk [vmem:[#allocation0] sm:$0x1] %vm33_vm5, %v32_v20  }
  0x7e   :  { %40 = vst.msk [vmem:[#allocation0] sm:$0x1] %vm39_vm6, %v38_v21  }
  0x80   :  { %v44_v22 = vpop.permute.xlu0 %43   ;;  %v50_v23 = vpop.permute.xlu1 %49  }
  0x81   :  { %46 = vst.msk [vmem:[#allocation0] sm:$0x1] %vm45_vm7, %v44_v22  }
  0x82   :  { %52 = vst.msk [vmem:[#allocation0] sm:$0x1] %vm51_vm8, %v50_v23  }
  0x84   :  { %v56_v24 = vpop.permute.xlu0 %55   ;;  %v62_v25 = vpop.permute.xlu1 %61  }
  0x85   :  { %58 = vst.msk [vmem:[#allocation0] sm:$0x1] %vm57_vm9, %v56_v24  }
  0x86   :  { %64 = vst.msk [vmem:[#allocation0] sm:$0x1] %vm63_vm10, %v62_v25  }
  0x88   :  { %v68_v26 = vpop.permute.xlu0 %67   ;;  %v74_v27 = vpop.permute.xlu1 %73  }
  0x89   :  { %70 = vst.msk [vmem:[#allocation0] sm:$0x1] %vm69_vm11, %v68_v26  }
  0x8a   :  { %76 = vst.msk [vmem:[#allocation0] sm:$0x1] %vm75_vm12, %v74_v27  }
  0x8c   :  { %v80_v28 = vpop.permute.xlu0 %79   ;;  %v86_v29 = vpop.permute.xlu1 %85  }
  0x8d   :  { %82 = vst.msk [vmem:[#allocation0] sm:$0x1] %vm81_vm13, %v80_v28  }
  0x8e   :  { %88 = vst.msk [vmem:[#allocation0] sm:$0x1] %vm87_vm14, %v86_v29  }
  0x90   :  { %v92_v30 = vpop.permute.xlu0 %91  }
  0x91   :  { %94 = vst.msk [vmem:[#allocation0] sm:$0x1] %vm93_vm15, %v92_v30  }
  0x98   :  { %v99_v31 = vld [vmem:[#allocation0] sm:$0x1] }
  0x99   :  { %102 = vst [vmem:[%s210_s1] sm:$0x1] %v99_v31 }

// kernel: tile.73
= control target key start
LH: loop header
LB: loop body
LE: loop exit
PB: predicated region body
PF: predicated region fallthrough
CT: control target
= control target key end

     0   :  { %s22_s0 = inlined_call_operand.vmem [shape: f32[16], index: 0, kind: input, shape index: {}]   ;;  %s23_s1 = inlined_call_operand.vmem [shape: f32[8,16], index: 1, kind: output, shape index: {}]  }
   0x1   :  { %v4_v0 = vld [vmem:[%s22_s0] ss:$0 sm:$0xff] }
   0x2   :  { %5 = vst [vmem:[%s23_s1] sm:$0xff] %v4_v0 }

// kernel: tile.74
= control target key start
LH: loop header
LB: loop body
LE: loop exit
PB: predicated region body
PF: predicated region fallthrough
CT: control target
= control target key end

     0   :  { %s69_s10 = smov 112   ;;  %s70_s11 = smov 80   ;;  %vm3_vm0 = vcmask 130048   ;;  %vm9_vm1 = vcmask 1048448   ;;  %vm15_vm2 = vcmask 917248   ;;  %vm21_vm3 = vcmask 786048   ;;  %s113_s0 = inlined_call_operand.vmem [shape: f32[8,16], index: 0, kind: input, shape index: {}]   ;;  %s114_s1 = inlined_call_operand.vmem [shape: f32[128], index: 1, kind: output, shape index: {}]  }
   0x1   :  { %v55_v0 = vld [vmem:[%s113_s0 + $0x7] sm:$0x1]   ;;  %v57_v1 = vld [vmem:[%s113_s0 + $0x5] sm:$0x1]   ;;  %v56_v2 = vld [vmem:[%s113_s0 + $0x6] sm:$0x1]  }
   0x2   :  { %7 = vrot.lane.b32.xlu0 %v55_v0, %s69_s10  ;;  %19 = vrot.lane.b32.xlu1 %v57_v1, %s70_s11  ;;  %v58_v3 = vld [vmem:[%s113_s0 + $0x4] sm:$0x1]   ;;  %v2_v4 = vld [vmem:[%s113_s0] sm:$0x1]   ;;  %s71_s18 = smov 96   ;;  %s72_s19 = smov 64  }
   0x3   :  { %4 = vst.msk [vmem:[#allocation0] sm:$0x1] %vm3_vm0, %v2_v4   ;;  %v59_v5 = vld [vmem:[%s113_s0 + $0x3] sm:$0x1]   ;;  %v60_v6 = vld [vmem:[%s113_s0 + $0x2] sm:$0x1]  }
   0x4   :  { %s73_s24 = smov 48   ;;  %s74_s25 = smov 32   ;;  %v61_v7 = vld [vmem:[%s113_s0 + $0x1] sm:$0x1]   ;;  %vm27_vm4 = vcmask 654848   ;;  %vm33_vm5 = vcmask 523648  }
   0x5   :  { %s75_s0 = smov 16   ;;  %vm39_vm6 = vcmask 392448   ;;  %vm45_vm7 = vcmask 261248  }
   0x6   :  { %13 = vrot.lane.b32.xlu0 %v56_v2, %s71_s18  ;;  %25 = vrot.lane.b32.xlu1 %v58_v3, %s72_s19 }
   0xa   :  { %31 = vrot.lane.b32.xlu0 %v59_v5, %s73_s24  ;;  %37 = vrot.lane.b32.xlu1 %v60_v6, %s74_s25 }
   0xe   :  { %43 = vrot.lane.b32.xlu0 %v61_v7, %s75_s0 }
  0x74   :  { %v8_v8 = vpop.permute.xlu0 %7   ;;  %v20_v9 = vpop.permute.xlu1 %19  }
  0x75   :  { %10 = vst.msk [vmem:[#allocation0] sm:$0x1] %vm9_vm1, %v8_v8  }
  0x78   :  { %v14_v10 = vpop.permute.xlu0 %13   ;;  %v26_v11 = vpop.permute.xlu1 %25  }
  0x79   :  { %16 = vst.msk [vmem:[#allocation0] sm:$0x1] %vm15_vm2, %v14_v10  }
  0x7a   :  { %22 = vst.msk [vmem:[#allocation0] sm:$0x1] %vm21_vm3, %v20_v9  }
  0x7b   :  { %28 = vst.msk [vmem:[#allocation0] sm:$0x1] %vm27_vm4, %v26_v11  }
  0x7c   :  { %v32_v12 = vpop.permute.xlu0 %31   ;;  %v38_v13 = vpop.permute.xlu1 %37  }
  0x7d   :  { %34 = vst.msk [vmem:[#allocation0] sm:$0x1] %vm33_vm5, %v32_v12  }
  0x7e   :  { %40 = vst.msk [vmem:[#allocation0] sm:$0x1] %vm39_vm6, %v38_v13  }
  0x80   :  { %v44_v14 = vpop.permute.xlu0 %43  }
  0x81   :  { %46 = vst.msk [vmem:[#allocation0] sm:$0x1] %vm45_vm7, %v44_v14  }
  0x88   :  { %v51_v15 = vld [vmem:[#allocation0] sm:$0x1] }
  0x89   :  { %54 = vst [vmem:[%s114_s1] sm:$0x1] %v51_v15 }

// kernel: tile.83
= control target key start
LH: loop header
LB: loop body
LE: loop exit
PB: predicated region body
PF: predicated region fallthrough
CT: control target
= control target key end

     0   :  { %s22_s0 = inlined_call_operand.vmem [shape: f32[32], index: 0, kind: input, shape index: {}]   ;;  %s23_s1 = inlined_call_operand.vmem [shape: f32[4,32], index: 1, kind: output, shape index: {}]  }
   0x1   :  { %v4_v0 = vld [vmem:[%s22_s0] ss:$0 sm:$0xff] }
   0x2   :  { %5 = vst [vmem:[%s23_s1] sm:$0xf] %v4_v0 }

// kernel: tile.84
= control target key start
LH: loop header
LB: loop body
LE: loop exit
PB: predicated region body
PF: predicated region fallthrough
CT: control target
= control target key end

     0   :  { %vm8_vm0 = vcmask 261120   ;;  %s40_s8 = smov 32   ;;  %s41_s9 = smov 64   ;;  %vm14_vm1 = vcmask 1048320   ;;  %vm20_vm2 = vcmask 785920   ;;  %vm26_vm3 = vcmask 523520   ;;  %s58_s0 = inlined_call_operand.vmem [shape: f32[4,32], index: 0, kind: input, shape index: {}]   ;;  %s59_s1 = inlined_call_operand.vmem [shape: f32[128], index: 1, kind: output, shape index: {}]  }
   0x1   :  { %v5_v0 = vld [vmem:[%s58_s0] sm:$0xf]  ;;  %s39_s0 = smov 96  }
   0x2   :  { %6 = vst [vmem:[#allocation1] sm:$0xf] %v5_v0 }
   0x9   :  { %v11_v1 = vld [vmem:[#allocation1 + $0x3] sm:$0x1]   ;;  %v23_v2 = vld [vmem:[#allocation1 + $0x1] sm:$0x1]   ;;  %v7_v3 = vld [vmem:[#allocation1] sm:$0x1]  }
   0xa   :  { %12 = vrot.lane.b32.xlu0 %v11_v1, %s39_s0  ;;  %24 = vrot.lane.b32.xlu1 %v23_v2, %s40_s8  ;;  %v17_v4 = vld [vmem:[#allocation1 + $0x2] sm:$0x1]   ;;  %9 = vst.msk [vmem:[#allocation0] sm:$0x1] %vm8_vm0, %v7_v3  }
   0xe   :  { %18 = vrot.lane.b32.xlu0 %v17_v4, %s41_s9 }
  0x7c   :  { %v13_v5 = vpop.permute.xlu0 %12   ;;  %v25_v6 = vpop.permute.xlu1 %24  }
  0x7d   :  { %15 = vst.msk [vmem:[#allocation0] sm:$0x1] %vm14_vm1, %v13_v5  }
  0x80   :  { %v19_v7 = vpop.permute.xlu0 %18  }
  0x81   :  { %21 = vst.msk [vmem:[#allocation0] sm:$0x1] %vm20_vm2, %v19_v7  }
  0x82   :  { %27 = vst.msk [vmem:[#allocation0] sm:$0x1] %vm26_vm3, %v25_v6  }
  0x89   :  { %v32_v8 = vld [vmem:[#allocation0] sm:$0x1] }
  0x8a   :  { %35 = vst [vmem:[%s59_s1] sm:$0x1] %v32_v8 }

// kernel: tile.93
= control target key start
LH: loop header
LB: loop body
LE: loop exit
PB: predicated region body
PF: predicated region fallthrough
CT: control target
= control target key end

     0   :  { %s22_s0 = inlined_call_operand.vmem [shape: f32[64], index: 0, kind: input, shape index: {}]   ;;  %s23_s1 = inlined_call_operand.vmem [shape: f32[2,64], index: 1, kind: output, shape index: {}]  }
   0x1   :  { %v4_v0 = vld [vmem:[%s22_s0] ss:$0 sm:$0xff] }
   0x2   :  { %5 = vst [vmem:[%s23_s1] sm:$0x3] %v4_v0 }

// kernel: tile.94
= control target key start
LH: loop header
LB: loop body
LE: loop exit
PB: predicated region body
PF: predicated region fallthrough
CT: control target
= control target key end

     0   :  { %vm8_vm0 = vcmask 523264   ;;  %vm14_vm1 = vcmask 1048064   ;;  %s42_s0 = inlined_call_operand.vmem [shape: f32[2,64], index: 0, kind: input, shape index: {}]   ;;  %s43_s1 = inlined_call_operand.vmem [shape: f32[128], index: 1, kind: output, shape index: {}]  }
   0x1   :  { %v5_v0 = vld [vmem:[%s42_s0] sm:$0x3]  ;;  %s25_s0 = smov 64  }
   0x2   :  { %6 = vst [vmem:[#allocation1] sm:$0x3] %v5_v0 }
   0x9   :  { %v11_v1 = vld [vmem:[#allocation1 + $0x1] sm:$0x1]   ;;  %v7_v2 = vld [vmem:[#allocation1] sm:$0x1]  }
   0xa   :  { %12 = vrot.lane.b32.xlu0 %v11_v1, %s25_s0  ;;  %9 = vst.msk [vmem:[#allocation0] sm:$0x1] %vm8_vm0, %v7_v2  }
  0x7c   :  { %v13_v3 = vpop.permute.xlu0 %12  }
  0x7d   :  { %15 = vst.msk [vmem:[#allocation0] sm:$0x1] %vm14_vm1, %v13_v3  }
  0x84   :  { %v20_v4 = vld [vmem:[#allocation0] sm:$0x1] }
  0x85   :  { %23 = vst [vmem:[%s43_s1] sm:$0x1] %v20_v4 }

// kernel: lora_forward.1
= control target key start
LH: loop header
LB: loop body
LE: loop exit
PB: predicated region body
PF: predicated region fallthrough
CT: control target
= control target key end

     0   :  { %s4892_s0 = inlined_call_operand.vmem [shape: bf16[2,16,64], index: 0, kind: input, shape index: {}]   ;;  %s4893_s1 = inlined_call_operand.vmem [shape: bf16[3,64,128], index: 1, kind: input, shape index: {}]   ;;  %s4894_s2 = inlined_call_operand.vmem [shape: f32[1,128], index: 2, kind: input, shape index: {}]   ;;  %s4895_s3 = inlined_call_operand.vmem [shape: f32[24,1], index: 3, kind: input, shape index: {}, may-alias: {3,6}]   ;;  %s4896_s4 = inlined_call_operand.vmem [shape: bf16[3,128,256], index: 4, kind: input, shape index: {}]   ;;  %s4897_s5 = inlined_call_operand.vmem [shape: f32[1,256], index: 5, kind: input, shape index: {}]   ;;  %s4898_s6 = inlined_call_operand.vmem [shape: f32[24,1], index: 6, kind: input, shape index: {}, may-alias: {3,6}]   ;;  %s4899_s7 = inlined_call_operand.vmem [shape: bf16[3,128,256], index: 7, kind: input, shape index: {}]   ;;  %s4900_s8 = inlined_call_operand.vmem [shape: f32[1,256], index: 8, kind: input, shape index: {}]   ;;  %s4901_s9 = inlined_call_operand.vmem [shape: f32[12,1], index: 9, kind: input, shape index: {}]   ;;  %s4902_s10 = inlined_call_operand.vmem [shape: bf16[3,128,256], index: 10, kind: input, shape index: {}]   ;;  %s4903_s11 = inlined_call_operand.vmem [shape: f32[1,256], index: 11, kind: input, shape index: {}]   ;;  %s4904_s12 = inlined_call_operand.vmem [shape: f32[6,1], index: 12, kind: input, shape index: {}]   ;;  %s4905_s13 = inlined_call_operand.vmem [shape: bf16[3,128,256], index: 13, kind: input, shape index: {}]   ;;  %s4906_s14 = inlined_call_operand.vmem [shape: f32[1,256], index: 14, kind: input, shape index: {}]   ;;  %s4907_s15 = inlined_call_operand.vmem [shape: f32[3,1], index: 15, kind: input, shape index: {}]   ;;  %s4908_s16 = inlined_call_operand.vmem [shape: bf16[1,3], index: 16, kind: input, shape index: {}]   ;;  %s4909_s17 = inlined_call_operand.vmem [shape: bf16[128,128], index: 17, kind: input, shape index: {}]   ;;  %s4910_s18 = inlined_call_operand.vmem [shape: f32[1,128], index: 18, kind: input, shape index: {}]   ;;  %s4911_s19 = inlined_call_operand.hbm [shape: f32[2,1,128], index: 19, kind: output, shape index: {}]  }
   0x1   :  { %4920 = sst [smem:[#allocation17_spill]] %s4892_s0 }
   0x2   :  { %4921 = sst [smem:[#allocation18_spill]] %s4893_s1 }
   0x3   :  { %4922 = sst [smem:[#allocation19_spill]] %s4894_s2 }
   0x4   :  { %4923 = sst [smem:[#allocation20_spill]] %s4895_s3 }
   0x5   :  { %4924 = sst [smem:[#allocation21_spill]] %s4896_s4 }
   0x6   :  { %24 = vsyncpa [#allocation9], 0 }
   0x7   :  { %26 = vsyncpa [#allocation9 + $0x1], 0  ;;  %s4049_s0 = smov 0   ;;  %s4051_s30 = smov 0  }
   0x8   :  { %s4053_s20 = smov 0   ;;  %s4055_s21 = smov 0  }
   0x9 LB: > { %4925 = sst [smem:[#allocation11_spill]] %s3930_s0  ;;  %s4070_s1 = sadd.s32 4294967295, %s3942_s21   ;;  %s3942_s21 = sphi %s4055_s21, %s4941_s21   ;;  %s3938_s20 = sphi %s4053_s20, %s4943_s20   ;;  %s3934_s30 = sphi %s4051_s30, %s4945_s30   ;;  %s3930_s0 = sphi %s4049_s0, %s4944_s0  }
   0xa   : > { %4926 = sst [smem:[#allocation12_spill]] %s3938_s20  ;;  %s3059_s22 = sadd.s32 4294967294, %s3942_s21  }
   0xb   : > { %4927 = sst [smem:[#allocation13_spill]] %s3942_s21  ;;  %s4074_s2 = sadd.s32 1, %s3942_s21  }
   0xc   : > { %4928 = sst [smem:[#allocation14_spill]] %s4074_s2  ;;  %s443_s23 = sadd.s32 1, %s3938_s20 }
   0xd   : > { %s440_s24 = ssub.s32 %s3942_s21, %s4074_s2  ;;  %p453_p0 = scmp.ne.s32.totalorder %s3938_s20, %s3934_s30 }
   0xe   : > { %p441_p1 = scmp.eq.s32.totalorder %s440_s24, 0  ;;  %p454_p2 = scmp.eq.s32.totalorder %s4070_s1, 1 }
   0xf   : > { %p459_p3 = scmp.ne.s32.totalorder %s3934_s30, %s3930_s0  ;;  %p460_p4 = scmp.eq.s32.totalorder %s3059_s22, 1 }
  0x10   : > { %s4085_s25 = scalar_select %p441_p1, %s3938_s20, %s443_s23  }
  0x11   : > { %p4087_p5 = por %p454_p2, %p453_p0  ;;  %p4091_p6 = por %p460_p4, %p459_p3 }
  0x12   : > { %4929 = sst [smem:[#allocation15_spill]] %s4085_s25  ;;  %p3062_p7 = scmp.ge.s32.totalorder %s3942_s21, 1 }
  0x13   : > { %s4931_s26 = scalar_select %p4091_p6, 1, 0 }
  0x14   : > { %p540_p8 = scmp.lt.s32.totalorder %s3942_s21, 3 }
  0x15   : > { %4932 = sst [smem:[#allocation16_spill]] %s4931_s26 }
  0x16   : > { %p541_p9 = pnand %p3062_p7, %p540_p8 }
  0x17   : > { %s4933_s29 = sld [smem:[#allocation18_spill]] (!%p541_p9)  ;;  %p595_p10 = scmp.lt.s32.totalorder (!%p541_p9), %s4070_s1, 1 }
  0x18   : > { %544 = sbr.rel (%p541_p9) target bundleno = 1698 (0x6a2), region = 96  ;;  %s4934_s27 = sld [smem:[#allocation17_spill]] (!%p541_p9) }
  0x19   : > { %s4936_s4 = sld [smem:[#allocation21_spill]] (!%p541_p9)  ;;  %s3429_s26 = sshll.u32 (!%p541_p9), %s4070_s1, 4 }
  0x1a   : > { %s4937_s25 = sld [smem:[#allocation19_spill]] (!%p541_p9) }
  0x1d   : > { %v3573_v0 = vld [vmem:[%s4933_s29 + $0x38] sm:$0xff]   ;;  %v3574_v1 = vld [vmem:[%s4933_s29 + $0x30] sm:$0xff]   ;;  %vm601_vm0 = vcmask 523264   ;;  %s596_s24 = scalar_select %p595_p10, %s4070_s1, 1  ;;  %v3575_v2 = vld [vmem:[%s4933_s29 + $0x28] sm:$0xff]   ;;  %v3944_v3 = vmov 0.0  }
  0x1e   : > { %3466 = vmatprep.subr.bf16.mxu0 %v3573_v0  ;;  %603 = vst.msk [vmem:[#allocation2 + $0x8] sm:$0xff] %vm601_vm0, %v3944_v3  ;;  %604 = vst.msk [vmem:[#allocation2 + $0x10] sm:$0xff] %vm601_vm0, %v3944_v3  ;;  %v3945_v5 = vmov 0   ;;  %v3576_v8 = vld [vmem:[%s4933_s29 + $0x20] sm:$0xff]   ;;  %v3577_v9 = vld [vmem:[%s4933_s29 + $0x18] sm:$0xff]   ;;  %vm3946_vm1 = vmmov 0  }
  0x1f   : > { %3467 = vmatpush3.bf16.msra.mxu0 %v3573_v0  ;;  %s3432_s2 = sshll.u32 %s596_s24, 3  ;;  %610 = vst [vmem:[#allocation4 + $0x20] sm:$0xff] %v3944_v3  ;;  %602 = vst.msk [vmem:[#allocation2] sm:$0xff] %vm601_vm0, %v3944_v3  ;;  %3571 = vset.pattern.permute.xlu0 %v3945_v5  ;;  %v1427_v14 = vld [vmem:[%s4898_s6] sm:$0xff]  ;;  %v3578_v20 = vld [vmem:[%s4933_s29 + $0x10] sm:$0xff]   ;;  %vm2825_vm2 = vcmask 1041408  }
  0x20   : > { %3468 = vmatprep.subr.bf16.mxu0 %v3574_v1  ;;  %605 = vst.msk [vmem:[#allocation2 + $0x18] sm:$0xff] %vm601_vm0, %v3944_v3  ;;  %606 = vst.msk [vmem:[#allocation2 + $0x20] sm:$0xff] %vm601_vm0, %v3944_v3  ;;  %s599_s28 = scalar_lea.vmem %s4934_s27, %s3432_s2  ;;  %3572 = vset.pattern.permute.xlu1 %v3945_v5  ;;  %s4935_s27 = sld [smem:[#allocation20_spill]]  ;;  %v1428_v23 = vld [vmem:[%s4898_s6 + $0x8] sm:$0xff]  ;;  %v1429_v24 = vld [vmem:[%s4898_s6 + $0x10] sm:$0xff]  ;;  %vm2837_vm5 = vcmask 1040384  }
  0x21   : > { %607 = vst [vmem:[#allocation3] sm:$0xff] %v3944_v3  ;;  %608 = vst [vmem:[#allocation3 + $0x20] sm:$0xff] %v3944_v3  ;;  %v3434_v4 = vld [vmem:[%s599_s28] sm:$0xff]   ;;  %1091 = vmatprep.mubr.bf16.mxu1 %v3945_v5  ;;  %v3579_v25 = vld [vmem:[%s4933_s29 + $0x8] sm:$0xff]   ;;  %vm2826_vm3 = vsmask.f32 1280  ;;  %s4851_s28 = scalar_lea.hbm %s4911_s19, %s3429_s26 }
  0x22   : > { %609 = vst [vmem:[#allocation4] sm:$0xff] %v3944_v3  ;;  %611 = vst [vmem:[#allocation5] sm:$0xff] %v3944_v3  ;;  %v3435_v6 = vunpack.c.l.bf16 %v3434_v4  ;;  %v3436_v7 = vunpack.c.h.bf16 %v3434_v4  ;;  %v1911_v26 = vld [vmem:[%s4901_s9] sm:$0xff]  ;;  %v1912_v27 = vld [vmem:[%s4901_s9 + $0x8] sm:$0xf]  ;;  %vm2833_vm6 = vcmask 23552  }
  0x23   : > { %613 = vst [vmem:[#allocation6] sm:$0xff] %v3944_v3  ;;  %3469 = vmatpush3.bf16.msra.mxu0 %v3574_v1  ;;  %v3580_v28 = vld [vmem:[%s4933_s29] sm:$0xff]   ;;  %v3581_v32 = vld [vmem:[%s4933_s29 + $0x58] sm:$0xff]   ;;  %v3582_v36 = vld [vmem:[%s4933_s29 + $0x50] sm:$0xff]   ;;  %s3948_s1 = smov [#allocation8]  }
  0x24   : > { %3470 = vmatprep.subr.bf16.mxu0 %v3575_v2  ;;  %619 = vst.msk [vmem:[#allocation2 + $0x8] sm:$0xff] %vm601_vm0, %v3435_v6  ;;  %620 = vst.msk [vmem:[#allocation2 + $0x10] sm:$0xff] %vm601_vm0, %v3436_v7  ;;  %v2368_v29 = vld [vmem:[%s4904_s12] sm:$0x3f]  ;;  %v3583_v38 = vld [vmem:[%s4933_s29 + $0x48] sm:$0xff]   ;;  %s3886_s2 = sshll.u32 %s3948_s1, 4  ;;  %s3887_s2 = int_to_ptr.vmem [resolvable:$false] %s3886_s2 }
  0x25   : > { %v2817_v30 = vld [vmem:[%s4907_s15] sm:$0x7]  ;;  %v3585_v42 = vld [vmem:[%s4936_s4 + $0xf4] ss:$8 sps:$4 sm:$0xff]   ;;  %v3587_v43 = vld [vmem:[%s4936_s4 + $0xf0] ss:$8 sps:$4 sm:$0xff]  }
  0x26   : > { %v912_v11 = vld [vmem:[%s4935_s27] sm:$0xff]  ;;  %v914_v12 = vld [vmem:[%s4935_s27 + $0x10] sm:$0xff]  ;;  %v913_v13 = vld [vmem:[%s4935_s27 + $0x8] sm:$0xff]  ;;  %1059 = vmatprep.subr.bf16.mxu1 %v3585_v42  ;;  %s3888_s24 = scalar_lea.vmem %s3887_s2, 32 }
  0x27   : > { %3471 = vmatpush3.bf16.msra.mxu0 %v3575_v2  ;;  %v636_v10 = vld [vmem:[#allocation2 + $0x18] sm:$0xff]  ;;  %917 = vperm.xlu0 %3571, %v912_v11   ;;  %v3584_v39 = vld [vmem:[%s4933_s29 + $0x40] sm:$0xff]   ;;  %vm2827_vm4 = vmand %vm2825_vm2, %vm2826_vm3 }
  0x28   : > { %3472 = vmatprep.subr.bf16.mxu0 %v3576_v8  ;;  %927 = vperm.xlu1 %3572, %v914_v12   ;;  %v638_v17 = vpack.c.bf16 %v636_v10, %v636_v10  ;;  %v806_v40 = vld [vmem:[#allocation2 + $0x19] sm:$0xff]  ;;  %v3591_v44 = vld [vmem:[%s4936_s4 + $0xe4] ss:$8 sps:$4 sm:$0xff]  }
  0x29   : > { %v808_v41 = vpack.c.bf16 %v806_v40, %v806_v40  ;;  %1060 = vmatpush1.bf16.msra.mxu1 %v3587_v43  ;;  %v3593_v45 = vld [vmem:[%s4936_s4 + $0xe0] ss:$8 sps:$4 sm:$0xff]   ;;  %v3597_v46 = vld [vmem:[%s4936_s4 + $0xd4] ss:$8 sps:$4 sm:$0xff]   ;;  %v3588_v47 = vld [vmem:[%s4936_s4 + $0x70] ss:$8 sps:$4 sm:$0xff]  }
  0x2a   : > { %1061 = vmatprep.subr.bf16.mxu1 %v3591_v44  ;;  %v3590_v48 = vld [vmem:[%s4936_s4 + $0x74] ss:$8 sps:$4 sm:$0xff]   ;;  %v3596_v49 = vld [vmem:[%s4936_s4 + $0x64] ss:$8 sps:$4 sm:$0xff]   ;;  %v3599_v50 = vld [vmem:[%s4936_s4 + $0xd0] ss:$8 sps:$4 sm:$0xff]  }
  0x2b   : > { %3473 = vmatpush3.bf16.msra.mxu0 %v3576_v8  ;;  %v634_v15 = vld [vmem:[#allocation2 + $0x8] sm:$0xff]  ;;  %v635_v16 = vld [vmem:[#allocation2 + $0x10] sm:$0xff]  ;;  %922 = vperm.xlu0 %3571, %v913_v13  }
  0x2c   : > { %3478 = vmatprep.subr.bf16.mxu0 %v3577_v9  ;;  %v621_v18 = vld [vmem:[#allocation2 + $0x7] sm:$0xff]  ;;  %v637_v19 = vpack.c.bf16 %v635_v16, %v634_v15  ;;  %v622_v21 = vld [vmem:[#allocation2 + $0xf] sm:$0xff]  ;;  %1432 = vperm.xlu1 %3572, %v1427_v14   ;;  %v623_v31 = vld [vmem:[#allocation2 + $0x17] sm:$0xff] }
  0x2d   : > { %v624_v22 = vpack.c.bf16 %v622_v21, %v621_v18  ;;  %v804_v33 = vld [vmem:[#allocation2 + $0x9] sm:$0xff]  ;;  %v805_v34 = vld [vmem:[#allocation2 + $0x11] sm:$0xff]  ;;  %v625_v35 = vpack.c.bf16 %v623_v31, %v623_v31  ;;  %1062 = vmatpush1.bf16.msra.mxu1 %v3593_v45 }
  0x2e   : > { %3474 = vmatprep.mubr.msk.bf16.mxu0 %vm601_vm0, %v637_v19  ;;  %v807_v37 = vpack.c.bf16 %v805_v34, %v804_v33  ;;  %1063 = vmatprep.subr.bf16.mxu1 %v3597_v46  ;;  %v3594_v51 = vld [vmem:[%s4936_s4 + $0x60] ss:$8 sps:$4 sm:$0xff]   ;;  %v3603_v52 = vld [vmem:[%s4936_s4 + $0xc4] ss:$8 sps:$4 sm:$0xff]   ;;  %v3609_v54 = vld [vmem:[%s4936_s4 + $0xb4] ss:$8 sps:$4 sm:$0xff]  }
  0x2f   : > { %3475 = vmatmul.mubr.msk.bf16.vlgmr.msra.gmra.mxu0 %vm601_vm0, %v638_v17  ;;  %1437 = vperm.xlu0 %3571, %v1428_v23   ;;  %v3605_v53 = vld [vmem:[%s4936_s4 + $0xc0] ss:$8 sps:$4 sm:$0xff]   ;;  %v3602_v55 = vld [vmem:[%s4936_s4 + $0x54] ss:$8 sps:$4 sm:$0xff]   ;;  %v3611_v56 = vld [vmem:[%s4936_s4 + $0xb0] ss:$8 sps:$4 sm:$0xff]  }
  0x30   : > { %3479 = vmatpush3.bf16.msra.mxu0 %v3577_v9  ;;  %3486 = vmatprep.mubr.msk.bf16.mxu0 %vm601_vm0, %v624_v22  ;;  %v3600_v57 = vld [vmem:[%s4936_s4 + $0x50] ss:$8 sps:$4 sm:$0xff]   ;;  %v3615_v58 = vld [vmem:[%s4936_s4 + $0xa4] ss:$8 sps:$4 sm:$0xff]   ;;  %v3617_v60 = vld [vmem:[%s4936_s4 + $0xa0] ss:$8 sps:$4 sm:$0xff]  }
  0x31   : > { %3480 = vmatprep.subr.bf16.mxu0 %v3578_v20  ;;  %1442 = vperm.xlu1 %3572, %v1429_v24   ;;  %v3608_v59 = vld [vmem:[%s4936_s4 + $0x44] ss:$8 sps:$4 sm:$0xff]   ;;  %v3606_v61 = vld [vmem:[%s4936_s4 + $0x40] ss:$8 sps:$4 sm:$0xff]   ;;  %v3621_v62 = vld [vmem:[%s4936_s4 + $0x94] ss:$8 sps:$4 sm:$0xff]  }
  0x32   : > { %1064 = vmatpush1.bf16.msra.mxu1 %v3599_v50  ;;  %v3614_v63 = vld [vmem:[%s4936_s4 + $0x34] ss:$8 sps:$4 sm:$0xff]   ;;  %v3623_v0 = vld [vmem:[%s4936_s4 + $0x90] ss:$8 sps:$4 sm:$0xff]   ;;  %v3627_v2 = vld [vmem:[%s4936_s4 + $0x84] ss:$8 sps:$4 sm:$0xff]  }
  0x33   : > { %1915 = vperm.xlu0 %3571, %v1911_v26   ;;  %1065 = vmatprep.subr.bf16.mxu1 %v3603_v52  ;;  %v3612_v1 = vld [vmem:[%s4936_s4 + $0x30] ss:$8 sps:$4 sm:$0xff]   ;;  %v3620_v3 = vld [vmem:[%s4936_s4 + $0x24] ss:$8 sps:$4 sm:$0xff]   ;;  %v3629_v4 = vld [vmem:[%s4936_s4 + $0x80] ss:$8 sps:$4 sm:$0xff]  }
  0x34   : > { %3481 = vmatpush3.bf16.msra.mxu0 %v3578_v20  ;;  %v3618_v6 = vld [vmem:[%s4936_s4 + $0x20] ss:$8 sps:$4 sm:$0xff]   ;;  %v3635_v7 = vld [vmem:[%s4936_s4 + $0x174] ss:$8 sps:$4 sm:$0xff]   ;;  %v3624_v8 = vld [vmem:[%s4936_s4 + $0x10] ss:$8 sps:$4 sm:$0xff]  }
  0x35   : > { %3482 = vmatprep.subr.bf16.mxu0 %v3579_v25  ;;  %1920 = vperm.xlu1 %3572, %v1912_v27   ;;  %v3626_v9 = vld [vmem:[%s4936_s4 + $0x14] ss:$8 sps:$4 sm:$0xff]   ;;  %v3632_v10 = vld [vmem:[%s4936_s4 + $0x4] ss:$8 sps:$4 sm:$0xff]   ;;  %v3630_v11 = vld [vmem:[%s4936_s4] ss:$8 sps:$4 sm:$0xff]  }
  0x36   : > { %1066 = vmatpush1.bf16.msra.mxu1 %v3605_v53  ;;  %v3099_v22 = vld [vmem:[%s4937_s25] ss:$0 sm:$0xff]  ;;  %v3633_v43 = vld [vmem:[%s4936_s4 + $0x170] ss:$8 sps:$4 sm:$0xff]   ;;  %v3638_v45 = vld [vmem:[%s4936_s4 + $0x164] ss:$8 sps:$4 sm:$0xff]  }
  0x37   : > { %2371 = vperm.xlu0 %3571, %v2368_v29   ;;  %1067 = vmatprep.subr.bf16.mxu1 %v3609_v54  ;;  %v3636_v46 = vld [vmem:[%s4936_s4 + $0x160] ss:$8 sps:$4 sm:$0xff]   ;;  %v3639_v50 = vld [vmem:[%s4936_s4 + $0x150] ss:$8 sps:$4 sm:$0xff]   ;;  %v3644_v53 = vld [vmem:[%s4936_s4 + $0x144] ss:$8 sps:$4 sm:$0xff]  }
  0x38   : > { %3483 = vmatpush3.bf16.msra.mxu0 %v3579_v25  ;;  %v3642_v54 = vld [vmem:[%s4936_s4 + $0x140] ss:$8 sps:$4 sm:$0xff]  }
  0x39   : > { %3484 = vmatprep.subr.bf16.mxu0 %v3580_v28  ;;  %2820 = vperm.xlu1 %3572, %v2817_v30  }
  0x3a   : > { %1068 = vmatpush1.bf16.msra.mxu1 %v3611_v56 }
  0x3b   : > { %1069 = vmatprep.subr.bf16.mxu1 %v3615_v58 }
  0x3c   : > { %3485 = vmatpush3.bf16.msra.mxu0 %v3580_v28 }
  0x3d   : > { %3490 = vmatprep.subr.bf16.mxu0 %v3581_v32 }
  0x3e   : > { %1070 = vmatpush1.bf16.msra.mxu1 %v3617_v60  ;;  %v3648_v60 = vld [vmem:[%s4936_s4 + $0x120] ss:$8 sps:$4 sm:$0xff]  }
  0x3f   : > { %3487 = vmatmul.mubr.msk.bf16.vlgmr.msra.gmra.mxu0 %vm601_vm0, %v625_v35  ;;  %1071 = vmatprep.subr.bf16.mxu1 %v3621_v62  ;;  %v3651_v62 = vld [vmem:[%s4936_s4 + $0x110] ss:$8 sps:$4 sm:$0xff]  }
  0x40   : > { %3491 = vmatpush3.bf16.msra.mxu0 %v3581_v32  ;;  %3498 = vmatprep.mubr.msk.bf16.mxu0 %vm601_vm0, %v807_v37 }
  0x41   : > { %3492 = vmatprep.subr.bf16.mxu0 %v3582_v36 }
  0x42   : > { %1072 = vmatpush1.bf16.msra.mxu1 %v3623_v0  ;;  %v3654_v0 = vld [vmem:[%s4936_s4 + $0x100] ss:$8 sps:$4 sm:$0xff]  }
  0x43   : > { %1073 = vmatprep.subr.bf16.mxu1 %v3627_v2 }
  0x44   : > { %3493 = vmatpush3.bf16.msra.mxu0 %v3582_v36 }
  0x45   : > { %3494 = vmatprep.subr.bf16.mxu0 %v3583_v38 }
  0x46   : > { %1074 = vmatpush1.bf16.msra.mxu1 %v3629_v4 }
  0x47   : > { %1343 = vmatprep.subr.bf16.mxu1 %v3635_v7  ;;  %v3657_v7 = vld [vmem:[%s4899_s7 + $0xf0] ss:$8 sps:$4 sm:$0xff]  }
  0x48   : > { %3495 = vmatpush3.bf16.msra.mxu0 %v3583_v38 }
  0x49   : > { %3496 = vmatprep.subr.bf16.mxu0 %v3584_v39 }
  0x4c   : > { %3497 = vmatpush3.bf16.msra.mxu0 %v3584_v39 }
  0x4d   : > { %1190 = vmatprep.subr.bf16.mxu0 %v3590_v48 }
  0x4f   : > { %3499 = vmatmul.mubr.msk.bf16.vlgmr.msra.gmra.mxu0 %vm601_vm0, %v808_v41 }
  0x50   : > { %1222 = vmatprep.mubr.bf16.mxu0 %v3945_v5  ;;  %1191 = vmatpush1.bf16.msra.mxu0 %v3588_v47  ;;  %v3641_v47 = vld [vmem:[%s4936_s4 + $0x154] ss:$8 sps:$4 sm:$0xff]  }
  0x51   : > { %1192 = vmatprep.subr.bf16.mxu0 %v3596_v49 }
  0x54   : > { %1193 = vmatpush1.bf16.msra.mxu0 %v3594_v51 }
  0x55   : > { %1194 = vmatprep.subr.bf16.mxu0 %v3602_v55  ;;  %v3647_v55 = vld [vmem:[%s4936_s4 + $0x134] ss:$8 sps:$4 sm:$0xff]  }
  0x58   : > { %1195 = vmatpush1.bf16.msra.mxu0 %v3600_v57  ;;  %v3645_v57 = vld [vmem:[%s4936_s4 + $0x130] ss:$8 sps:$4 sm:$0xff]  }
  0x59   : > { %1196 = vmatprep.subr.bf16.mxu0 %v3608_v59  ;;  %v3650_v59 = vld [vmem:[%s4936_s4 + $0x124] ss:$8 sps:$4 sm:$0xff]  }
  0x5c   : > { %1197 = vmatpush1.bf16.msra.mxu0 %v3606_v61  ;;  %v3653_v61 = vld [vmem:[%s4936_s4 + $0x114] ss:$8 sps:$4 sm:$0xff]  }
  0x5d   : > { %1198 = vmatprep.subr.bf16.mxu0 %v3614_v63  ;;  %v3656_v63 = vld [vmem:[%s4936_s4 + $0x104] ss:$8 sps:$4 sm:$0xff]   ;;  %s593_s4 = sand.u32 1, %s3934_s30  }
  0x5e   : > { %s594_s20 = scalar_lea.vmem [#allocation8], %s593_s4  ;;  %s2992_s22 = scalar_lea.sflag [#allocation9], %s593_s4 }
  0x5f   : > { %s3004_s25 = sshll.u32 %s594_s20, 4  ;;  %s4853_s25 = int_to_ptr.vmem [resolvable:$true] %s3004_s25 }
  0x60   : > { %1199 = vmatpush1.bf16.msra.mxu0 %v3612_v1  ;;  %s3882_s23 = scalar_lea.vmem %s4853_s25, 16  ;;  %p3889_p0 = scmp.lt.s32.totalorder %s4853_s25, %s3887_s2 }
  0x61   : > { %1200 = vmatprep.subr.bf16.mxu0 %v3620_v3  ;;  %p3883_p11 = scmp.ne.s32.totalorder %s4853_s25, %s3882_s23  ;;  %p3890_p1 = scmp.lt.s32.totalorder %s3888_s24, %s3882_s23 }
  0x63   : > { %p3884_p12 = pnand %p3883_p11, %p4087_p5  ;;  %p3891_p2 = por %p3890_p1, %p3889_p0 }
  0x64   : > { %1201 = vmatpush1.bf16.msra.mxu0 %v3618_v6 }
  0x65   : > { %1202 = vmatprep.subr.bf16.mxu0 %v3626_v9  ;;  %v3660_v9 = vld [vmem:[%s4899_s7 + $0x70] ss:$8 sps:$4 sm:$0xff]   ;;  %p3885_p13 = pneg %p3884_p12 }
  0x67   : > { %p3892_p3 = pnand %p3891_p2, %p3885_p13 }
  0x68   : > { %1203 = vmatpush1.bf16.msra.mxu0 %v3624_v8  ;;  %v3659_v8 = vld [vmem:[%s4899_s7 + $0xf4] ss:$8 sps:$4 sm:$0xff]  }
  0x69   : > { %1204 = vmatprep.subr.bf16.mxu0 %v3632_v10  ;;  %v3662_v10 = vld [vmem:[%s4899_s7 + $0x74] ss:$8 sps:$4 sm:$0xff]  }
  0x6c   : > { %1205 = vmatpush1.bf16.msra.mxu0 %v3630_v11  ;;  %v3665_v11 = vld [vmem:[%s4899_s7 + $0xe4] ss:$8 sps:$4 sm:$0xff]  }
  0x6d   : > { %1574 = vmatprep.subr.bf16.mxu0 %v3659_v8 }
  0xa2   : > { %v918_v33 = vpop.permute.xlu0 %917 }
  0xa3   : > { %v928_v29 = vpop.permute.xlu1 %927 }
  0xa6   : > { %v923_v41 = vpop.permute.xlu0 %922 }
  0xef   : > { %v3476_v12 = vpop.f32.mrf.mxu0 }
  0xf1   : > { %v712_v13 = vpop.f32.mrf.mxu0 }
  0xf3   : > { %v3477_v14 = vpop.f32.mrf.mxu0 }
  0xf4   : > { %v3666_v14 = vld [vmem:[%s4899_s7 + $0x60] ss:$8 sps:$4 sm:$0xff]  }
  0xf5   : > { %v715_v15 = vpop.f32.mrf.mxu0 }
  0xff   : > { %v3488_v16 = vpop.f32.mrf.mxu0 }
 0x100   : > { %v799_v20 = vadd.f32 %v3488_v16, %v3476_v12  ;;  %v3663_v12 = vld [vmem:[%s4899_s7 + $0xe0] ss:$8 sps:$4 sm:$0xff]   ;;  %v3669_v16 = vld [vmem:[%s4899_s7 + $0xd0] ss:$8 sps:$4 sm:$0xff]  }
 0x101   : > { %v790_v17 = vpop.f32.mrf.mxu0 }
 0x102   : > { %v791_v23 = vadd.f32 %v790_v17, %v712_v13  ;;  %v3668_v13 = vld [vmem:[%s4899_s7 + $0x64] ss:$8 sps:$4 sm:$0xff]   ;;  %v3674_v17 = vld [vmem:[%s4899_s7 + $0x54] ss:$8 sps:$4 sm:$0xff]  }
 0x103   : > { %v3489_v18 = vpop.f32.mrf.mxu0 }
 0x104   : > { %v3672_v18 = vld [vmem:[%s4899_s7 + $0x50] ss:$8 sps:$4 sm:$0xff]  }
 0x105   : > { %v793_v19 = vpop.f32.mrf.mxu0 }
 0x106   : > { %v794_v30 = vadd.f32 %v793_v19, %v715_v15  ;;  %v3671_v15 = vld [vmem:[%s4899_s7 + $0xd4] ss:$8 sps:$4 sm:$0xff]   ;;  %v3677_v19 = vld [vmem:[%s4899_s7 + $0xc4] ss:$8 sps:$4 sm:$0xff]  }
 0x10f   : > { %v3500_v21 = vpop.f32.mrf.mxu0 }
 0x110   : > { %v898_v24 = vadd.f32 %v3500_v21, %v799_v20  ;;  %v3675_v20 = vld [vmem:[%s4899_s7 + $0xc0] ss:$8 sps:$4 sm:$0xff]   ;;  %v3680_v21 = vld [vmem:[%s4899_s7 + $0x44] ss:$8 sps:$4 sm:$0xff]  }
 0x111   : > { %v882_v25 = vpop.f32.mrf.mxu0 }
 0x112   : > { %v908_v26 = vadd.f32 %v3099_v22, %v898_v24  ;;  %v896_v27 = vadd.f32 %v882_v25, %v791_v23  ;;  %v3683_v23 = vld [vmem:[%s4899_s7 + $0xb4] ss:$8 sps:$4 sm:$0xff]   ;;  %v3681_v24 = vld [vmem:[%s4899_s7 + $0xb0] ss:$8 sps:$4 sm:$0xff]  }
 0x113   : > { %v3501_v28 = vpop.f32.mrf.mxu0  ;;  %v3686_v25 = vld [vmem:[%s4899_s7 + $0x34] ss:$8 sps:$4 sm:$0xff]  }
 0x114   : > { %v906_v31 = vadd.f32 %v3099_v22, %v896_v27  ;;  %v911_v32 = vmax.f32 %v908_v26, 0.0  ;;  %v3684_v26 = vld [vmem:[%s4899_s7 + $0x30] ss:$8 sps:$4 sm:$0xff]   ;;  %v3689_v27 = vld [vmem:[%s4899_s7 + $0xa4] ss:$8 sps:$4 sm:$0xff]  }
 0x115   : > { %v885_v34 = vpop.f32.mrf.mxu0  ;;  %v3687_v28 = vld [vmem:[%s4899_s7 + $0xa0] ss:$8 sps:$4 sm:$0xff]  }
 0x116   : > { %v909_v35 = vmax.f32 %v906_v31, 0.0  ;;  %v932_v36 = vmul.f32 %v928_v29, %v911_v32  ;;  %v897_v37 = vadd.f32 %v885_v34, %v794_v30  ;;  %v3692_v29 = vld [vmem:[%s4899_s7 + $0x24] ss:$8 sps:$4 sm:$0xff]   ;;  %v3690_v30 = vld [vmem:[%s4899_s7 + $0x20] ss:$8 sps:$4 sm:$0xff]  }
 0x117   : > { %v3695_v31 = vld [vmem:[%s4899_s7 + $0x94] ss:$8 sps:$4 sm:$0xff]   ;;  %v3693_v32 = vld [vmem:[%s4899_s7 + $0x90] ss:$8 sps:$4 sm:$0xff]  }
 0x118   : > { %v930_v38 = vmul.f32 %v918_v33, %v909_v35  ;;  %935 = vst [vmem:[#allocation3 + $0x18] sm:$0xff] %v932_v36  ;;  %v907_v39 = vadd.f32 %v3099_v22, %v897_v37  ;;  %v961_v52 = vpack.c.bf16 %v932_v36, %v932_v36  ;;  %v3678_v22 = vld [vmem:[%s4899_s7 + $0x40] ss:$8 sps:$4 sm:$0xff]   ;;  %v3696_v33 = vld [vmem:[%s4899_s7 + $0x10] ss:$8 sps:$4 sm:$0xff]  }
 0x119   : > { %v3698_v34 = vld [vmem:[%s4899_s7 + $0x14] ss:$8 sps:$4 sm:$0xff]   ;;  %v3701_v35 = vld [vmem:[%s4899_s7 + $0x84] ss:$8 sps:$4 sm:$0xff]   ;;  %v3699_v36 = vld [vmem:[%s4899_s7 + $0x80] ss:$8 sps:$4 sm:$0xff]  }
 0x11a   : > { %933 = vst [vmem:[#allocation3 + $0x8] sm:$0xff] %v930_v38  ;;  %v910_v40 = vmax.f32 %v907_v39, 0.0  ;;  %v3704_v37 = vld [vmem:[%s4899_s7 + $0x4] ss:$8 sps:$4 sm:$0xff]   ;;  %v3707_v39 = vld [vmem:[%s4899_s7 + $0x174] ss:$8 sps:$4 sm:$0xff]  }
 0x11c   : > { %v931_v42 = vmul.f32 %v923_v41, %v910_v40 }
 0x11e   : > { %934 = vst [vmem:[#allocation3 + $0x10] sm:$0xff] %v931_v42  ;;  %v960_v44 = vpack.c.bf16 %v931_v42, %v930_v38  ;;  %v3702_v38 = vld [vmem:[%s4899_s7] ss:$8 sps:$4 sm:$0xff]  }
 0x11f   : > { %v1243_v4 = vld [vmem:[#allocation3 + $0x19] sm:$0xff] }
 0x120   : > { %1092 = vmatmul.mubr.bf16.vlgmr.msra.gmra.mxu1 %v960_v44  ;;  %v1245_v6 = vpack.c.bf16 %v1243_v4, %v1243_v4 }
 0x121   : > { %1344 = vmatpush1.bf16.msra.mxu1 %v3633_v43  ;;  %1101 = vmatprep.mubr.bf16.mxu1 %v3945_v5  ;;  %v936_v48 = vld [vmem:[#allocation3 + $0x7] sm:$0xff] }
 0x122   : > { %1345 = vmatprep.subr.bf16.mxu1 %v3638_v45 }
 0x125   : > { %v937_v49 = vld [vmem:[#allocation3 + $0xf] sm:$0xff]  ;;  %1346 = vmatpush1.bf16.msra.mxu1 %v3636_v46  ;;  %v938_v56 = vld [vmem:[#allocation3 + $0x17] sm:$0xff] }
 0x126   : > { %v939_v51 = vpack.c.bf16 %v937_v49, %v936_v48  ;;  %1347 = vmatprep.subr.bf16.mxu1 %v3641_v47  ;;  %v940_v58 = vpack.c.bf16 %v938_v56, %v938_v56  ;;  %v1241_v1 = vld [vmem:[#allocation3 + $0x9] sm:$0xff]  ;;  %v1242_v2 = vld [vmem:[#allocation3 + $0x11] sm:$0xff] }
 0x127   : > { %v1244_v3 = vpack.c.bf16 %v1242_v2, %v1241_v1 }
 0x128   : > { %1223 = vmatmul.mubr.bf16.vlgmr.msra.gmra.mxu0 %v939_v51  ;;  %1102 = vmatmul.mubr.bf16.gmra.mxu1 %v961_v52 }
 0x129   : > { %1232 = vmatprep.mubr.bf16.mxu0 %v3945_v5  ;;  %1348 = vmatpush1.bf16.msra.mxu1 %v3639_v50 }
 0x12a   : > { %1349 = vmatprep.subr.bf16.mxu1 %v3644_v53  ;;  %1375 = vmatprep.mubr.bf16.mxu1 %v3945_v5 }
 0x12b   : > { %1575 = vmatpush1.bf16.msra.mxu0 %v3657_v7 }
 0x12c   : > { %1576 = vmatprep.subr.bf16.mxu0 %v3665_v11 }
 0x12d   : > { %1350 = vmatpush1.bf16.msra.mxu1 %v3642_v54  ;;  %v1402_v54 = vlaneseq }
 0x12e   : > { %1351 = vmatprep.subr.bf16.mxu1 %v3647_v55 }
 0x12f   : > { %1577 = vmatpush1.bf16.msra.mxu0 %v3663_v12 }
 0x130   : > { %1233 = vmatmul.mubr.bf16.gmra.mxu0 %v940_v58  ;;  %1578 = vmatprep.subr.bf16.mxu0 %v3671_v15 }
 0x131   : > { %1352 = vmatpush1.bf16.msra.mxu1 %v3645_v57  ;;  %1606 = vmatprep.mubr.bf16.mxu0 %v3945_v5  ;;  %v1403_v57 = vshrl.u32 %v1402_v54, 7  ;;  %v3719_v54 = vld [vmem:[%s4899_s7 + $0x134] ss:$8 sps:$4 sm:$0xff]  }
 0x132   : > { %1353 = vmatprep.subr.bf16.mxu1 %v3650_v59  ;;  %v1400_v59 = vld [vmem:[%s4897_s5] sm:$0x3] }
 0x133   : > { %1579 = vmatpush1.bf16.msra.mxu0 %v3669_v16  ;;  %v4437_v58 = vsub.s32 0, %v1403_v57 }
 0x134   : > { %1580 = vmatprep.subr.bf16.mxu0 %v3677_v19 }
 0x135   : > { %1354 = vmatpush1.bf16.msra.mxu1 %v3648_v60  ;;  %v4442_v60 = vsub.s32 1, %v1403_v57  ;;  %v3720_v57 = vld [vmem:[%s4899_s7 + $0x120] ss:$8 sps:$4 sm:$0xff]  }
 0x136   : > { %1355 = vmatprep.subr.bf16.mxu1 %v3653_v61 }
 0x137   : > { %1581 = vmatpush1.bf16.msra.mxu0 %v3675_v20  ;;  %v1409_v2 = vrot.slane %v1400_v59, %v4442_v60 }
 0x138   : > { %1582 = vmatprep.subr.bf16.mxu0 %v3683_v23  ;;  %v1433_v23 = vpop.permute.xlu1 %1432 }
 0x139   : > { %1356 = vmatpush1.bf16.msra.mxu1 %v3651_v62  ;;  %v1405_v62 = vrot.slane %v1400_v59, %v4437_v58  ;;  %v3725_v59 = vld [vmem:[%s4899_s7 + $0x114] ss:$8 sps:$4 sm:$0xff]  }
 0x13a   : > { %1357 = vmatprep.subr.bf16.mxu1 %v3656_v63 }
 0x13b   : > { %1583 = vmatpush1.bf16.msra.mxu0 %v3681_v24 }
 0x13c   : > { %1584 = vmatprep.subr.bf16.mxu0 %v3689_v27 }
 0x13d   : > { %1358 = vmatpush1.bf16.msra.mxu1 %v3654_v0 }
 0x13e   : > { %1697 = vmatprep.subr.bf16.mxu1 %v3662_v10 }
 0x13f   : > { %1585 = vmatpush1.bf16.msra.mxu0 %v3687_v28 }
 0x140   : > { %1376 = vmatmul.mubr.bf16.vlgmr.msra.gmra.mxu1 %v1244_v3  ;;  %1586 = vmatprep.subr.bf16.mxu0 %v3695_v31 }
 0x141   : > { %1385 = vmatprep.mubr.bf16.mxu1 %v3945_v5  ;;  %1698 = vmatpush1.bf16.msra.mxu1 %v3660_v9 }
 0x142   : > { %1699 = vmatprep.subr.bf16.mxu1 %v3668_v13 }
 0x143   : > { %1587 = vmatpush1.bf16.msra.mxu0 %v3693_v32 }
 0x144   : > { %1588 = vmatprep.subr.bf16.mxu0 %v3701_v35 }
 0x145   : > { %1700 = vmatpush1.bf16.msra.mxu1 %v3666_v14 }
 0x146   : > { %1701 = vmatprep.subr.bf16.mxu1 %v3674_v17 }
 0x147   : > { %1589 = vmatpush1.bf16.msra.mxu0 %v3699_v36 }
 0x148   : > { %1386 = vmatmul.mubr.bf16.gmra.mxu1 %v1245_v6  ;;  %1842 = vmatprep.subr.bf16.mxu0 %v3707_v39  ;;  %v1443_v39 = vpop.permute.xlu1 %1442 }
 0x149   : > { %1729 = vmatprep.mubr.bf16.mxu1 %v3945_v5  ;;  %1702 = vmatpush1.bf16.msra.mxu1 %v3672_v18 }
 0x14a   : > { %1703 = vmatprep.subr.bf16.mxu1 %v3680_v21 }
 0x14d   : > { %1704 = vmatpush1.bf16.msra.mxu1 %v3678_v22 }
 0x14e   : > { %1705 = vmatprep.subr.bf16.mxu1 %v3686_v25 }
 0x151   : > { %1706 = vmatpush1.bf16.msra.mxu1 %v3684_v26 }
 0x152   : > { %1707 = vmatprep.subr.bf16.mxu1 %v3692_v29 }
 0x155   : > { %1708 = vmatpush1.bf16.msra.mxu1 %v3690_v30 }
 0x156   : > { %1709 = vmatprep.subr.bf16.mxu1 %v3698_v34 }
 0x159   : > { %1710 = vmatpush1.bf16.msra.mxu1 %v3696_v33  ;;  %v1438_v33 = vpop.permute.xlu0 %1437 }
 0x15a   : > { %1711 = vmatprep.subr.bf16.mxu1 %v3704_v37 }
 0x15d   : > { %1712 = vmatpush1.bf16.msra.mxu1 %v3702_v38 }
 0x1e0   : > { %v1093_v40 = vpop.f32.mrf.mxu1 }
 0x1e2   : > { %v1095_v41 = vpop.f32.mrf.mxu1 }
 0x1e4   : > { %v1097_v42 = vpop.f32.mrf.mxu1 }
 0x1e6   : > { %v1099_v43 = vpop.f32.mrf.mxu1 }
 0x1e8   : > { %v1224_v44 = vpop.f32.mrf.mxu0  ;;  %v1103_v45 = vpop.f32.mrf.mxu1 }
 0x1e9   : > { %v1225_v61 = vadd.f32 %v1224_v44, %v1093_v40 }
 0x1ea   : > { %v1226_v46 = vpop.f32.mrf.mxu0  ;;  %v1105_v47 = vpop.f32.mrf.mxu1 }
 0x1eb   : > { %v1227_v0 = vadd.f32 %v1226_v46, %v1095_v41  ;;  %v3705_v41 = vld [vmem:[%s4899_s7 + $0x170] ss:$8 sps:$4 sm:$0xff]  }
 0x1ec   : > { %v1228_v48 = vpop.f32.mrf.mxu0  ;;  %v1107_v49 = vpop.f32.mrf.mxu1 }
 0x1ed   : > { %v1229_v4 = vadd.f32 %v1228_v48, %v1097_v42  ;;  %v3710_v48 = vld [vmem:[%s4899_s7 + $0x164] ss:$8 sps:$4 sm:$0xff]   ;;  %v3708_v49 = vld [vmem:[%s4899_s7 + $0x160] ss:$8 sps:$4 sm:$0xff]  }
 0x1ee   : > { %v1230_v50 = vpop.f32.mrf.mxu0  ;;  %v1108_v51 = vpop.f32.mrf.mxu1 }
 0x1ef   : > { %v1231_v9 = vadd.f32 %v1230_v50, %v1099_v43  ;;  %v3713_v50 = vld [vmem:[%s4899_s7 + $0x154] ss:$8 sps:$4 sm:$0xff]   ;;  %v3711_v51 = vld [vmem:[%s4899_s7 + $0x150] ss:$8 sps:$4 sm:$0xff]  }
 0x1f0   : > { %v1234_v52 = vpop.f32.mrf.mxu0 }
 0x1f1   : > { %v1235_v12 = vadd.f32 %v1234_v52, %v1103_v45  ;;  %v3716_v52 = vld [vmem:[%s4899_s7 + $0x144] ss:$8 sps:$4 sm:$0xff]  }
 0x1f2   : > { %v1236_v53 = vpop.f32.mrf.mxu0 }
 0x1f3   : > { %v1237_v19 = vadd.f32 %v1236_v53, %v1105_v47  ;;  %v3714_v53 = vld [vmem:[%s4899_s7 + $0x140] ss:$8 sps:$4 sm:$0xff]  }
 0x1f4   : > { %v1238_v55 = vpop.f32.mrf.mxu0 }
 0x1f5   : > { %v3717_v55 = vld [vmem:[%s4899_s7 + $0x130] ss:$8 sps:$4 sm:$0xff]  }
 0x1f6   : > { %v1239_v56 = vpop.f32.mrf.mxu0 }
 0x1f7   : > { %v3722_v56 = vld [vmem:[%s4899_s7 + $0x124] ss:$8 sps:$4 sm:$0xff]  }
 0x200   : > { %v1377_v63 = vpop.f32.mrf.mxu1 }
 0x201   : > { %v1394_v1 = vadd.f32 %v1377_v63, %v1225_v61  ;;  %v3723_v61 = vld [vmem:[%s4899_s7 + $0x110] ss:$8 sps:$4 sm:$0xff]   ;;  %v3726_v63 = vld [vmem:[%s4899_s7 + $0x100] ss:$8 sps:$4 sm:$0xff]  }
 0x202   : > { %v1379_v3 = vpop.f32.mrf.mxu1 }
 0x203   : > { %v1412_v6 = vadd.f32 %v1405_v62, %v1394_v1  ;;  %v1395_v7 = vadd.f32 %v1379_v3, %v1227_v0  ;;  %v3729_v3 = vld [vmem:[%s4902_s10 + $0xf0] ss:$8 sps:$4 sm:$0xff]  }
 0x204   : > { %v1381_v8 = vpop.f32.mrf.mxu1 }
 0x205   : > { %v1413_v10 = vadd.f32 %v1409_v2, %v1395_v7  ;;  %v1396_v11 = vadd.f32 %v1381_v8, %v1229_v4  ;;  %v1418_v14 = vmax.f32 %v1412_v6, 0.0  ;;  %v3731_v4 = vld [vmem:[%s4902_s10 + $0xf4] ss:$8 sps:$4 sm:$0xff]   ;;  %v3732_v6 = vld [vmem:[%s4902_s10 + $0x70] ss:$8 sps:$4 sm:$0xff]  }
 0x206   : > { %v1383_v13 = vpop.f32.mrf.mxu1  ;;  %v3734_v7 = vld [vmem:[%s4902_s10 + $0x74] ss:$8 sps:$4 sm:$0xff]   ;;  %v3737_v8 = vld [vmem:[%s4902_s10 + $0xe4] ss:$8 sps:$4 sm:$0xff]   ;;  %2046 = vmatprep.subr.bf16.mxu1 %v3731_v4 }
 0x207   : > { %v1421_v15 = vmul.f32 0.05, %v1413_v10  ;;  %v1414_v16 = vadd.f32 %v1405_v62, %v1396_v11  ;;  %v1397_v17 = vadd.f32 %v1383_v13, %v1231_v9  ;;  %v3740_v9 = vld [vmem:[%s4902_s10 + $0x64] ss:$8 sps:$4 sm:$0xff]   ;;  %v3735_v10 = vld [vmem:[%s4902_s10 + $0xe0] ss:$8 sps:$4 sm:$0xff]  }
 0x208   : > { %v1387_v18 = vpop.f32.mrf.mxu1  ;;  %v3738_v11 = vld [vmem:[%s4902_s10 + $0x60] ss:$8 sps:$4 sm:$0xff]   ;;  %v3741_v13 = vld [vmem:[%s4902_s10 + $0xd0] ss:$8 sps:$4 sm:$0xff]  }
 0x209   : > { %v1424_v20 = vadd.f32 %v1421_v15, %v1418_v14  ;;  %v1415_v21 = vadd.f32 %v1409_v2, %v1397_v17  ;;  %v1398_v22 = vadd.f32 %v1387_v18, %v1235_v12  ;;  %v1419_v24 = vmax.f32 %v1414_v16, 0.0  ;;  %v3743_v12 = vld [vmem:[%s4902_s10 + $0xd4] ss:$8 sps:$4 sm:$0xff]   ;;  %v3744_v15 = vld [vmem:[%s4902_s10 + $0x50] ss:$8 sps:$4 sm:$0xff]  }
 0x20a   : > { %v1389_v25 = vpop.f32.mrf.mxu1  ;;  %v3746_v14 = vld [vmem:[%s4902_s10 + $0x54] ss:$8 sps:$4 sm:$0xff]   ;;  %v3749_v16 = vld [vmem:[%s4902_s10 + $0xc4] ss:$8 sps:$4 sm:$0xff]   ;;  %v3747_v17 = vld [vmem:[%s4902_s10 + $0xc0] ss:$8 sps:$4 sm:$0xff]  }
 0x20b   : > { %v1445_v26 = vmul.f32 %v1433_v23, %v1424_v20  ;;  %v1422_v27 = vmul.f32 0.05, %v1415_v21  ;;  %v1416_v28 = vadd.f32 %v1405_v62, %v1398_v22  ;;  %v1399_v29 = vadd.f32 %v1389_v25, %v1237_v19  ;;  %v3728_v62 = vld [vmem:[%s4899_s7 + $0x104] ss:$8 sps:$4 sm:$0xff]   ;;  %v3750_v19 = vld [vmem:[%s4902_s10 + $0x40] ss:$8 sps:$4 sm:$0xff]  }
 0x20c   : > { %v1391_v30 = vpop.f32.mrf.mxu1  ;;  %v3752_v18 = vld [vmem:[%s4902_s10 + $0x44] ss:$8 sps:$4 sm:$0xff]   ;;  %v3755_v20 = vld [vmem:[%s4902_s10 + $0xb4] ss:$8 sps:$4 sm:$0xff]   ;;  %v3753_v21 = vld [vmem:[%s4902_s10 + $0xb0] ss:$8 sps:$4 sm:$0xff]  }
 0x20d   : > { %1448 = vst [vmem:[#allocation4 + $0x8] sm:$0xff] %v1445_v26  ;;  %v1425_v31 = vadd.f32 %v1422_v27, %v1419_v24  ;;  %v1417_v32 = vadd.f32 %v1409_v2, %v1399_v29  ;;  %v1420_v36 = vmax.f32 %v1416_v28, 0.0  ;;  %v3758_v22 = vld [vmem:[%s4902_s10 + $0x34] ss:$8 sps:$4 sm:$0xff]   ;;  %v3756_v23 = vld [vmem:[%s4902_s10 + $0x30] ss:$8 sps:$4 sm:$0xff]  }
 0x20e   : > { %v1392_v34 = vpop.f32.mrf.mxu1  ;;  %v3761_v24 = vld [vmem:[%s4902_s10 + $0xa4] ss:$8 sps:$4 sm:$0xff]   ;;  %v3759_v25 = vld [vmem:[%s4902_s10 + $0xa0] ss:$8 sps:$4 sm:$0xff]   ;;  %v3767_v28 = vld [vmem:[%s4902_s10 + $0x94] ss:$8 sps:$4 sm:$0xff]  }
 0x20f   : > { %v1446_v35 = vmul.f32 %v1438_v33, %v1425_v31  ;;  %v1423_v37 = vmul.f32 0.05, %v1417_v32  ;;  %v3764_v26 = vld [vmem:[%s4902_s10 + $0x24] ss:$8 sps:$4 sm:$0xff]   ;;  %v3762_v27 = vld [vmem:[%s4902_s10 + $0x20] ss:$8 sps:$4 sm:$0xff]  }
 0x210   : > { %v3765_v29 = vld [vmem:[%s4902_s10 + $0x90] ss:$8 sps:$4 sm:$0xff]   ;;  %v3770_v31 = vld [vmem:[%s4902_s10 + $0x14] ss:$8 sps:$4 sm:$0xff]   ;;  %v3773_v32 = vld [vmem:[%s4902_s10 + $0x84] ss:$8 sps:$4 sm:$0xff]  }
 0x211   : > { %1449 = vst [vmem:[#allocation4 + $0x10] sm:$0xff] %v1446_v35  ;;  %v1426_v38 = vadd.f32 %v1423_v37, %v1420_v36  ;;  %v3768_v30 = vld [vmem:[%s4902_s10 + $0x10] ss:$8 sps:$4 sm:$0xff]   ;;  %v3771_v33 = vld [vmem:[%s4902_s10 + $0x80] ss:$8 sps:$4 sm:$0xff]  }
 0x212   : > { %v3776_v34 = vld [vmem:[%s4902_s10 + $0x4] ss:$8 sps:$4 sm:$0xff]   ;;  %v3774_v35 = vld [vmem:[%s4902_s10] ss:$8 sps:$4 sm:$0xff]   ;;  %v3779_v36 = vld [vmem:[%s4902_s10 + $0x174] ss:$8 sps:$4 sm:$0xff]  }
 0x213   : > { %v1447_v40 = vmul.f32 %v1443_v39, %v1426_v38 }
 0x215   : > { %1450 = vst [vmem:[#allocation4 + $0x18] sm:$0xff] %v1447_v40 }
 0x218   : > { %v1473_v42 = vld [vmem:[#allocation4 + $0x8] ss:$2 sm:$0xff]  ;;  %v1452_v43 = vld [vmem:[#allocation4 + $0x7] ss:$2 sm:$0xff] }
 0x219   : > { %v1741_v1 = vld [vmem:[#allocation4 + $0x9] ss:$2 sm:$0xff] }
 0x21c   : > { %v1475_v44 = vld [vmem:[#allocation4 + $0x18] ss:$2 sm:$0xf]  ;;  %v1454_v45 = vld [vmem:[#allocation4 + $0x17] ss:$2 sm:$0xf] }
 0x21d   : > { %v1476_v46 = vpack.c.bf16 %v1475_v44, %v1473_v42  ;;  %v1455_v47 = vpack.c.bf16 %v1454_v45, %v1452_v43  ;;  %v1743_v0 = vld [vmem:[#allocation4 + $0x19] ss:$2 sm:$0xf]  ;;  %v1889_v42 = vld [vmem:[%s4900_s8] sm:$0x3] }
 0x21e   : > { %v1744_v2 = vpack.c.bf16 %v1743_v0, %v1741_v1 }
 0x21f   : > { %1607 = vmatmul.mubr.bf16.vlgmr.msra.gmra.mxu0 %v1476_v46  ;;  %1730 = vmatmul.mubr.bf16.vlgmr.msra.gmra.mxu1 %v1455_v47  ;;  %v1894_v46 = vrot.slane %v1889_v42, %v4437_v58 }
 0x220   : > { %1843 = vmatpush1.bf16.msra.mxu0 %v3705_v41  ;;  %1874 = vmatprep.mubr.bf16.mxu0 %v3945_v5 }
 0x221   : > { %1844 = vmatprep.subr.bf16.mxu0 %v3710_v48  ;;  %2078 = vmatprep.mubr.bf16.mxu1 %v3945_v5 }
 0x222   : > { %2047 = vmatpush1.bf16.msra.mxu1 %v3729_v3 }
 0x223   : > { %2048 = vmatprep.subr.bf16.mxu1 %v3737_v8 }
 0x224   : > { %1845 = vmatpush1.bf16.msra.mxu0 %v3708_v49 }
 0x225   : > { %1846 = vmatprep.subr.bf16.mxu0 %v3713_v50  ;;  %v1898_v50 = vrot.slane %v1889_v42, %v4442_v60  ;;  %v3815_v42 = vld [vmem:[%s4905_s13 + $0xd4] ss:$8 sps:$4 sm:$0xff]  }
 0x226   : > { %2049 = vmatpush1.bf16.msra.mxu1 %v3735_v10 }
 0x227   : > { %2050 = vmatprep.subr.bf16.mxu1 %v3743_v12 }
 0x228   : > { %1847 = vmatpush1.bf16.msra.mxu0 %v3711_v51 }
 0x229   : > { %1848 = vmatprep.subr.bf16.mxu0 %v3716_v52 }
 0x22a   : > { %2051 = vmatpush1.bf16.msra.mxu1 %v3741_v13  ;;  %v3777_v13 = vld [vmem:[%s4902_s10 + $0x170] ss:$8 sps:$4 sm:$0xff]  }
 0x22b   : > { %2052 = vmatprep.subr.bf16.mxu1 %v3749_v16 }
 0x22c   : > { %1849 = vmatpush1.bf16.msra.mxu0 %v3714_v53 }
 0x22d   : > { %1850 = vmatprep.subr.bf16.mxu0 %v3719_v54 }
 0x22e   : > { %2053 = vmatpush1.bf16.msra.mxu1 %v3747_v17 }
 0x22f   : > { %2054 = vmatprep.subr.bf16.mxu1 %v3755_v20  ;;  %v3785_v20 = vld [vmem:[%s4902_s10 + $0x154] ss:$8 sps:$4 sm:$0xff]  }
 0x230   : > { %1851 = vmatpush1.bf16.msra.mxu0 %v3717_v55 }
 0x231   : > { %1852 = vmatprep.subr.bf16.mxu0 %v3722_v56 }
 0x232   : > { %2055 = vmatpush1.bf16.msra.mxu1 %v3753_v21  ;;  %v3783_v21 = vld [vmem:[%s4902_s10 + $0x150] ss:$8 sps:$4 sm:$0xff]  }
 0x233   : > { %2056 = vmatprep.subr.bf16.mxu1 %v3761_v24  ;;  %v3791_v24 = vld [vmem:[%s4902_s10 + $0x134] ss:$8 sps:$4 sm:$0xff]  }
 0x234   : > { %1853 = vmatpush1.bf16.msra.mxu0 %v3720_v57 }
 0x235   : > { %1854 = vmatprep.subr.bf16.mxu0 %v3725_v59 }
 0x236   : > { %2057 = vmatpush1.bf16.msra.mxu1 %v3759_v25  ;;  %v3789_v25 = vld [vmem:[%s4902_s10 + $0x130] ss:$8 sps:$4 sm:$0xff]  }
 0x237   : > { %2058 = vmatprep.subr.bf16.mxu1 %v3767_v28  ;;  %v3797_v28 = vld [vmem:[%s4902_s10 + $0x114] ss:$8 sps:$4 sm:$0xff]  }
 0x238   : > { %1855 = vmatpush1.bf16.msra.mxu0 %v3723_v61 }
 0x239   : > { %1856 = vmatprep.subr.bf16.mxu0 %v3728_v62 }
 0x23a   : > { %2059 = vmatpush1.bf16.msra.mxu1 %v3765_v29  ;;  %v3795_v29 = vld [vmem:[%s4902_s10 + $0x110] ss:$8 sps:$4 sm:$0xff]  }
 0x23b   : > { %2060 = vmatprep.subr.bf16.mxu1 %v3773_v32 }
 0x23c   : > { %1857 = vmatpush1.bf16.msra.mxu0 %v3726_v63 }
 0x23d   : > { %2167 = vmatprep.subr.bf16.mxu0 %v3734_v7 }
 0x23e   : > { %2061 = vmatpush1.bf16.msra.mxu1 %v3771_v33 }
 0x23f   : > { %1875 = vmatmul.mubr.bf16.vlgmr.msra.gmra.mxu0 %v1744_v2  ;;  %2308 = vmatprep.subr.bf16.mxu1 %v3779_v36  ;;  %v3804_v36 = vld [vmem:[%s4905_s13 + $0x70] ss:$8 sps:$4 sm:$0xff]  }
 0x240   : > { %2199 = vmatprep.mubr.bf16.mxu0 %v3945_v5  ;;  %2168 = vmatpush1.bf16.msra.mxu0 %v3732_v6  ;;  %v1916_v6 = vpop.permute.xlu0 %1915 }
 0x241   : > { %2169 = vmatprep.subr.bf16.mxu0 %v3740_v9 }
 0x244   : > { %2170 = vmatpush1.bf16.msra.mxu0 %v3738_v11  ;;  %v1921_v11 = vpop.permute.xlu1 %1920 }
 0x245   : > { %2171 = vmatprep.subr.bf16.mxu0 %v3746_v14 }
 0x248   : > { %2172 = vmatpush1.bf16.msra.mxu0 %v3744_v15 }
 0x249   : > { %2173 = vmatprep.subr.bf16.mxu0 %v3752_v18  ;;  %v3782_v18 = vld [vmem:[%s4902_s10 + $0x164] ss:$8 sps:$4 sm:$0xff]  }
 0x24c   : > { %2174 = vmatpush1.bf16.msra.mxu0 %v3750_v19  ;;  %v3780_v19 = vld [vmem:[%s4902_s10 + $0x160] ss:$8 sps:$4 sm:$0xff]  }
 0x24d   : > { %2175 = vmatprep.subr.bf16.mxu0 %v3758_v22  ;;  %v3788_v22 = vld [vmem:[%s4902_s10 + $0x144] ss:$8 sps:$4 sm:$0xff]  }
 0x250   : > { %2176 = vmatpush1.bf16.msra.mxu0 %v3756_v23  ;;  %v3786_v23 = vld [vmem:[%s4902_s10 + $0x140] ss:$8 sps:$4 sm:$0xff]  }
 0x251   : > { %2177 = vmatprep.subr.bf16.mxu0 %v3764_v26  ;;  %v3794_v26 = vld [vmem:[%s4902_s10 + $0x124] ss:$8 sps:$4 sm:$0xff]  }
 0x254   : > { %2178 = vmatpush1.bf16.msra.mxu0 %v3762_v27  ;;  %v3792_v27 = vld [vmem:[%s4902_s10 + $0x120] ss:$8 sps:$4 sm:$0xff]  }
 0x255   : > { %2179 = vmatprep.subr.bf16.mxu0 %v3770_v31  ;;  %v3798_v31 = vld [vmem:[%s4902_s10 + $0x100] ss:$8 sps:$4 sm:$0xff]  }
 0x258   : > { %2180 = vmatpush1.bf16.msra.mxu0 %v3768_v30  ;;  %v3800_v30 = vld [vmem:[%s4902_s10 + $0x104] ss:$8 sps:$4 sm:$0xff]  }
 0x259   : > { %2181 = vmatprep.subr.bf16.mxu0 %v3776_v34  ;;  %v3801_v34 = vld [vmem:[%s4905_s13 + $0xf0] ss:$8 sps:$4 sm:$0xff]  }
 0x25c   : > { %2182 = vmatpush1.bf16.msra.mxu0 %v3774_v35  ;;  %v3803_v35 = vld [vmem:[%s4905_s13 + $0xf4] ss:$8 sps:$4 sm:$0xff]  }
 0x25d   : > { %2495 = vmatprep.subr.bf16.mxu0 %v3803_v35 }
 0x2df   : > { %v1608_v37 = vpop.f32.mrf.mxu0  ;;  %v1731_v38 = vpop.f32.mrf.mxu1 }
 0x2e0   : > { %v1732_v45 = vadd.f32 %v1731_v38, %v1608_v37  ;;  %v3806_v37 = vld [vmem:[%s4905_s13 + $0x74] ss:$8 sps:$4 sm:$0xff]   ;;  %v3809_v38 = vld [vmem:[%s4905_s13 + $0xe4] ss:$8 sps:$4 sm:$0xff]  }
 0x2e1   : > { %v1610_v39 = vpop.f32.mrf.mxu0  ;;  %v1733_v40 = vpop.f32.mrf.mxu1 }
 0x2e2   : > { %v1734_v48 = vadd.f32 %v1733_v40, %v1610_v39  ;;  %v3812_v39 = vld [vmem:[%s4905_s13 + $0x64] ss:$8 sps:$4 sm:$0xff]   ;;  %v3807_v40 = vld [vmem:[%s4905_s13 + $0xe0] ss:$8 sps:$4 sm:$0xff]  }
 0x2e3   : > { %v1612_v41 = vpop.f32.mrf.mxu0  ;;  %v1735_v43 = vpop.f32.mrf.mxu1 }
 0x2e4   : > { %v1736_v53 = vadd.f32 %v1735_v43, %v1612_v41  ;;  %v3810_v41 = vld [vmem:[%s4905_s13 + $0x60] ss:$8 sps:$4 sm:$0xff]   ;;  %v3818_v43 = vld [vmem:[%s4905_s13 + $0x54] ss:$8 sps:$4 sm:$0xff]  }
 0x2e5   : > { %v1614_v44 = vpop.f32.mrf.mxu0  ;;  %v1737_v51 = vpop.f32.mrf.mxu1 }
 0x2e6   : > { %v1738_v57 = vadd.f32 %v1737_v51, %v1614_v44  ;;  %v3813_v44 = vld [vmem:[%s4905_s13 + $0xd0] ss:$8 sps:$4 sm:$0xff]  }
 0x2e7   : > { %v3825_v51 = vld [vmem:[%s4905_s13 + $0xb0] ss:$8 sps:$4 sm:$0xff]  }
 0x2ff   : > { %v1876_v47 = vpop.f32.mrf.mxu0 }
 0x300   : > { %v1885_v49 = vadd.f32 %v1876_v47, %v1732_v45  ;;  %v3816_v45 = vld [vmem:[%s4905_s13 + $0x50] ss:$8 sps:$4 sm:$0xff]   ;;  %v3819_v47 = vld [vmem:[%s4905_s13 + $0xc0] ss:$8 sps:$4 sm:$0xff]  }
 0x301   : > { %v1878_v52 = vpop.f32.mrf.mxu0 }
 0x302   : > { %v1901_v54 = vadd.f32 %v1894_v46, %v1885_v49  ;;  %v1886_v55 = vadd.f32 %v1878_v52, %v1734_v48  ;;  %v3824_v48 = vld [vmem:[%s4905_s13 + $0x44] ss:$8 sps:$4 sm:$0xff]   ;;  %v3822_v49 = vld [vmem:[%s4905_s13 + $0x40] ss:$8 sps:$4 sm:$0xff]   ;;  %v3830_v52 = vld [vmem:[%s4905_s13 + $0x34] ss:$8 sps:$4 sm:$0xff]  }
 0x303   : > { %v1880_v56 = vpop.f32.mrf.mxu0 }
 0x304   : > { %v1902_v59 = vadd.f32 %v1898_v50, %v1886_v55  ;;  %v1887_v61 = vadd.f32 %v1880_v56, %v1736_v53  ;;  %v1905_v63 = vmax.f32 %v1901_v54, 0.0  ;;  %v3828_v53 = vld [vmem:[%s4905_s13 + $0x30] ss:$8 sps:$4 sm:$0xff]   ;;  %v3833_v54 = vld [vmem:[%s4905_s13 + $0xa4] ss:$8 sps:$4 sm:$0xff]  }
 0x305   : > { %v1882_v62 = vpop.f32.mrf.mxu0  ;;  %v3831_v55 = vld [vmem:[%s4905_s13 + $0xa0] ss:$8 sps:$4 sm:$0xff]   ;;  %v3836_v56 = vld [vmem:[%s4905_s13 + $0x24] ss:$8 sps:$4 sm:$0xff]  }
 0x306   : > { %v1907_v0 = vmul.f32 0.05, %v1902_v59  ;;  %v1903_v1 = vadd.f32 %v1894_v46, %v1887_v61  ;;  %v1888_v2 = vadd.f32 %v1882_v62, %v1738_v57  ;;  %v3821_v46 = vld [vmem:[%s4905_s13 + $0xc4] ss:$8 sps:$4 sm:$0xff]   ;;  %v3834_v57 = vld [vmem:[%s4905_s13 + $0x20] ss:$8 sps:$4 sm:$0xff]  }
 0x307   : > { %v3839_v59 = vld [vmem:[%s4905_s13 + $0x94] ss:$8 sps:$4 sm:$0xff]   ;;  %v3837_v61 = vld [vmem:[%s4905_s13 + $0x90] ss:$8 sps:$4 sm:$0xff]  }
 0x308   : > { %v1909_v3 = vadd.f32 %v1907_v0, %v1905_v63  ;;  %v1904_v4 = vadd.f32 %v1898_v50, %v1888_v2  ;;  %v1906_v8 = vmax.f32 %v1903_v1, 0.0  ;;  %v3827_v50 = vld [vmem:[%s4905_s13 + $0xb4] ss:$8 sps:$4 sm:$0xff]   ;;  %v3840_v62 = vld [vmem:[%s4905_s13 + $0x10] ss:$8 sps:$4 sm:$0xff]  }
 0x309   : > { %v3842_v63 = vld [vmem:[%s4905_s13 + $0x14] ss:$8 sps:$4 sm:$0xff]   ;;  %v3845_v0 = vld [vmem:[%s4905_s13 + $0x84] ss:$8 sps:$4 sm:$0xff]   ;;  %v3843_v1 = vld [vmem:[%s4905_s13 + $0x80] ss:$8 sps:$4 sm:$0xff]  }
 0x30a   : > { %v1923_v7 = vmul.f32 %v1916_v6, %v1909_v3  ;;  %v1908_v9 = vmul.f32 0.05, %v1904_v4  ;;  %v3848_v2 = vld [vmem:[%s4905_s13 + $0x4] ss:$8 sps:$4 sm:$0xff]   ;;  %v3846_v3 = vld [vmem:[%s4905_s13] ss:$8 sps:$4 sm:$0xff]  }
 0x30b   : > { %v3851_v4 = vld [vmem:[%s4905_s13 + $0x174] ss:$8 sps:$4 sm:$0xff]  }
 0x30c   : > { %1925 = vst [vmem:[#allocation5 + $0x8] sm:$0xff] %v1923_v7  ;;  %v1910_v10 = vadd.f32 %v1908_v9, %v1906_v8  ;;  %v4745_v6 = vld [vmem:[#allocation4 + $0x20] sm:$0xff] }
 0x30e   : > { %v1924_v12 = vmul.f32 %v1921_v11, %v1910_v10 }
 0x310   : > { %1926 = vst [vmem:[#allocation5 + $0x10] sm:$0xf] %v1924_v12 }
 0x317   : > { %v1947_v14 = vld [vmem:[#allocation5 + $0x8] ss:$2 sm:$0x3f]  ;;  %v1928_v15 = vld [vmem:[#allocation5 + $0x7] ss:$2 sm:$0x3f] }
 0x318   : > { %v1948_v16 = vpack.c.bf16 %v1947_v14, %v1947_v14  ;;  %v1929_v17 = vpack.c.bf16 %v1928_v15, %v1928_v15  ;;  %v2209_v32 = vld [vmem:[#allocation5 + $0x9] ss:$2 sm:$0x3f] }
 0x319   : > { %v2210_v33 = vpack.c.bf16 %v2209_v32, %v2209_v32  ;;  %v2351_v15 = vld [vmem:[%s4903_s11] sm:$0x3] }
 0x31a   : > { %2079 = vmatmul.mubr.bf16.vlgmr.msra.gmra.mxu1 %v1948_v16  ;;  %2200 = vmatmul.mubr.bf16.vlgmr.msra.gmra.mxu0 %v1929_v17  ;;  %v2356_v17 = vrot.slane %v2351_v15, %v4437_v58 }
 0x31b   : > { %2309 = vmatpush1.bf16.msra.mxu1 %v3777_v13  ;;  %2340 = vmatprep.mubr.bf16.mxu1 %v3945_v5 }
 0x31c   : > { %2310 = vmatprep.subr.bf16.mxu1 %v3782_v18  ;;  %2527 = vmatprep.mubr.bf16.mxu0 %v3945_v5 }
 0x31d   : > { %2496 = vmatpush1.bf16.msra.mxu0 %v3801_v34 }
 0x31e   : > { %2497 = vmatprep.subr.bf16.mxu0 %v3809_v38  ;;  %v3854_v38 = vld [vmem:[%s4905_s13 + $0x164] ss:$8 sps:$4 sm:$0xff]  }
 0x31f   : > { %2311 = vmatpush1.bf16.msra.mxu1 %v3780_v19 }
 0x320   : > { %2312 = vmatprep.subr.bf16.mxu1 %v3785_v20 }
 0x321   : > { %2498 = vmatpush1.bf16.msra.mxu0 %v3807_v40  ;;  %v3857_v40 = vld [vmem:[%s4905_s13 + $0x154] ss:$8 sps:$4 sm:$0xff]  }
 0x322   : > { %2499 = vmatprep.subr.bf16.mxu0 %v3815_v42  ;;  %v3860_v42 = vld [vmem:[%s4905_s13 + $0x144] ss:$8 sps:$4 sm:$0xff]  }
 0x323   : > { %2313 = vmatpush1.bf16.msra.mxu1 %v3783_v21  ;;  %v2360_v21 = vrot.slane %v2351_v15, %v4442_v60 }
 0x324   : > { %2314 = vmatprep.subr.bf16.mxu1 %v3788_v22 }
 0x325   : > { %2500 = vmatpush1.bf16.msra.mxu0 %v3813_v44  ;;  %v3861_v44 = vld [vmem:[%s4905_s13 + $0x130] ss:$8 sps:$4 sm:$0xff]  }
 0x326   : > { %2501 = vmatprep.subr.bf16.mxu0 %v3821_v46  ;;  %v3864_v46 = vld [vmem:[%s4905_s13 + $0x120] ss:$8 sps:$4 sm:$0xff]  }
 0x327   : > { %2315 = vmatpush1.bf16.msra.mxu1 %v3786_v23 }
 0x328   : > { %2316 = vmatprep.subr.bf16.mxu1 %v3791_v24 }
 0x329   : > { %2502 = vmatpush1.bf16.msra.mxu0 %v3819_v47  ;;  %v3869_v47 = vld [vmem:[%s4905_s13 + $0x114] ss:$8 sps:$4 sm:$0xff]  }
 0x32a   : > { %2503 = vmatprep.subr.bf16.mxu0 %v3827_v50  ;;  %v3870_v50 = vld [vmem:[%s4905_s13 + $0x100] ss:$8 sps:$4 sm:$0xff]  }
 0x32b   : > { %2317 = vmatpush1.bf16.msra.mxu1 %v3789_v25 }
 0x32c   : > { %2318 = vmatprep.subr.bf16.mxu1 %v3794_v26 }
 0x32d   : > { %2504 = vmatpush1.bf16.msra.mxu0 %v3825_v51 }
 0x32e   : > { %2505 = vmatprep.subr.bf16.mxu0 %v3833_v54 }
 0x32f   : > { %2319 = vmatpush1.bf16.msra.mxu1 %v3792_v27 }
 0x330   : > { %2320 = vmatprep.subr.bf16.mxu1 %v3797_v28 }
 0x331   : > { %2506 = vmatpush1.bf16.msra.mxu0 %v3831_v55 }
 0x332   : > { %2507 = vmatprep.subr.bf16.mxu0 %v3839_v59 }
 0x333   : > { %2321 = vmatpush1.bf16.msra.mxu1 %v3795_v29 }
 0x334   : > { %2322 = vmatprep.subr.bf16.mxu1 %v3800_v30 }
 0x335   : > { %2508 = vmatpush1.bf16.msra.mxu0 %v3837_v61 }
 0x336   : > { %2509 = vmatprep.subr.bf16.mxu0 %v3845_v0 }
 0x337   : > { %2323 = vmatpush1.bf16.msra.mxu1 %v3798_v31  ;;  %v2372_v31 = vpop.permute.xlu0 %2371 }
 0x338   : > { %2616 = vmatprep.subr.bf16.mxu1 %v3806_v37 }
 0x339   : > { %2510 = vmatpush1.bf16.msra.mxu0 %v3843_v1 }
 0x33a   : > { %2341 = vmatmul.mubr.bf16.vlgmr.msra.gmra.mxu1 %v2210_v33  ;;  %2757 = vmatprep.subr.bf16.mxu0 %v3851_v4  ;;  %v3849_v33 = vld [vmem:[%s4905_s13 + $0x170] ss:$8 sps:$4 sm:$0xff]  }
 0x33b   : > { %2648 = vmatprep.mubr.bf16.mxu1 %v3945_v5  ;;  %2617 = vmatpush1.bf16.msra.mxu1 %v3804_v36 }
 0x33c   : > { %2618 = vmatprep.subr.bf16.mxu1 %v3812_v39  ;;  %v3852_v39 = vld [vmem:[%s4905_s13 + $0x160] ss:$8 sps:$4 sm:$0xff]  }
 0x33f   : > { %2619 = vmatpush1.bf16.msra.mxu1 %v3810_v41  ;;  %v3855_v41 = vld [vmem:[%s4905_s13 + $0x150] ss:$8 sps:$4 sm:$0xff]  }
 0x340   : > { %2620 = vmatprep.subr.bf16.mxu1 %v3818_v43  ;;  %v3863_v43 = vld [vmem:[%s4905_s13 + $0x134] ss:$8 sps:$4 sm:$0xff]  }
 0x343   : > { %2621 = vmatpush1.bf16.msra.mxu1 %v3816_v45  ;;  %v3866_v45 = vld [vmem:[%s4905_s13 + $0x124] ss:$8 sps:$4 sm:$0xff]  }
 0x344   : > { %2622 = vmatprep.subr.bf16.mxu1 %v3824_v48  ;;  %v3867_v48 = vld [vmem:[%s4905_s13 + $0x110] ss:$8 sps:$4 sm:$0xff]  }
 0x347   : > { %2623 = vmatpush1.bf16.msra.mxu1 %v3822_v49  ;;  %v3872_v49 = vld [vmem:[%s4905_s13 + $0x104] ss:$8 sps:$4 sm:$0xff]  }
 0x348   : > { %2624 = vmatprep.subr.bf16.mxu1 %v3830_v52 }
 0x34b   : > { %2625 = vmatpush1.bf16.msra.mxu1 %v3828_v53 }
 0x34c   : > { %2626 = vmatprep.subr.bf16.mxu1 %v3836_v56 }
 0x34f   : > { %2627 = vmatpush1.bf16.msra.mxu1 %v3834_v57 }
 0x350   : > { %2628 = vmatprep.subr.bf16.mxu1 %v3842_v63  ;;  %v2800_v63 = vld [vmem:[%s4906_s14] sm:$0x3] }
 0x351   : > { %v2805_v1 = vrot.slane %v2800_v63, %v4437_v58  ;;  %v2828_v58 = vld [vmem:[#allocation7] sm:$0x3] }
 0x353   : > { %2629 = vmatpush1.bf16.msra.mxu1 %v3840_v62 }
 0x354   : > { %2630 = vmatprep.subr.bf16.mxu1 %v3848_v2 }
 0x357   : > { %2631 = vmatpush1.bf16.msra.mxu1 %v3846_v3 }
 0x358   : > { %3502 = vmatprep.subr.bf16.mxu1 %v4745_v6 }
 0x3da   : > { %v2080_v7 = vpop.f32.mrf.mxu1  ;;  %v2201_v8 = vpop.f32.mrf.mxu0 }
 0x3db   : > { %v2202_v16 = vadd.f32 %v2201_v8, %v2080_v7  ;;  %v2809_v7 = vrot.slane %v2800_v63, %v4442_v60  ;;  %v3947_v60 = vmov 65535  }
 0x3dc   : > { %v2082_v9 = vpop.f32.mrf.mxu1  ;;  %v2203_v10 = vpop.f32.mrf.mxu0 }
 0x3dd   : > { %v2204_v19 = vadd.f32 %v2203_v10, %v2082_v9 }
 0x3de   : > { %v2084_v11 = vpop.f32.mrf.mxu1  ;;  %v2205_v12 = vpop.f32.mrf.mxu0 }
 0x3e0   : > { %v2085_v13 = vpop.f32.mrf.mxu1  ;;  %v2206_v14 = vpop.f32.mrf.mxu0 }
 0x3fa   : > { %v2342_v18 = vpop.f32.mrf.mxu1 }
 0x3fb   : > { %v2349_v20 = vadd.f32 %v2342_v18, %v2202_v16 }
 0x3fc   : > { %v2344_v22 = vpop.f32.mrf.mxu1 }
 0x3fd   : > { %v2363_v23 = vadd.f32 %v2356_v17, %v2349_v20  ;;  %v2350_v24 = vadd.f32 %v2344_v22, %v2204_v19  ;;  %v2821_v17 = vpop.permute.xlu1 %2820 }
 0x3fe   : > { %v2346_v25 = vpop.f32.mrf.mxu1 }
 0x3ff   : > { %v2364_v26 = vadd.f32 %v2360_v21, %v2350_v24  ;;  %v2365_v28 = vmax.f32 %v2363_v23, 0.0  ;;  %v2839_v21 = vsel %vm2837_vm5, 4294967295, %v3947_v60  ;;  %v2831_v25 = vld [vmem:[%s4908_s16] sm:$0x1] }
 0x400   : > { %v2347_v27 = vpop.f32.mrf.mxu1  ;;  %v2840_v22 = vsel %vm2825_vm2, %v2839_v21, 0 }
 0x401   : > { %v2366_v29 = vmul.f32 0.05, %v2364_v26  ;;  %v3873_v26 = vld [vmem:[%s4909_s17 + $0x38] sm:$0xff]   ;;  %v3874_v27 = vld [vmem:[%s4909_s17 + $0x30] sm:$0xff]  }
 0x403   : > { %v2367_v30 = vadd.f32 %v2366_v29, %v2365_v28  ;;  %v3875_v28 = vld [vmem:[%s4909_s17 + $0x28] sm:$0xff]   ;;  %v3876_v29 = vld [vmem:[%s4909_s17 + $0x20] sm:$0xff]  }
 0x405   : > { %v2374_v32 = vmul.f32 %v2372_v31, %v2367_v30  ;;  %v3877_v30 = vld [vmem:[%s4909_s17 + $0x18] sm:$0xff]   ;;  %v3878_v31 = vld [vmem:[%s4909_s17 + $0x10] sm:$0xff]  }
 0x407   : > { %2375 = vst [vmem:[#allocation6 + $0x8] sm:$0x3f] %v2374_v32  ;;  %v3879_v32 = vld [vmem:[%s4909_s17 + $0x8] sm:$0xff]  }
 0x40e   : > { %v2396_v34 = vld [vmem:[#allocation6 + $0x8] ss:$2 sm:$0x7]  ;;  %v2377_v35 = vld [vmem:[#allocation6 + $0x7] ss:$2 sm:$0x7] }
 0x40f   : > { %v2397_v36 = vpack.c.bf16 %v2396_v34, %v2396_v34  ;;  %v2378_v37 = vpack.c.bf16 %v2377_v35, %v2377_v35  ;;  %v2658_v51 = vld [vmem:[#allocation6 + $0x9] ss:$2 sm:$0x7] }
 0x410   : > { %v2659_v52 = vpack.c.bf16 %v2658_v51, %v2658_v51 }
 0x411   : > { %2528 = vmatmul.mubr.bf16.vlgmr.msra.gmra.mxu0 %v2397_v36  ;;  %2649 = vmatmul.mubr.bf16.vlgmr.msra.gmra.mxu1 %v2378_v37 }
 0x412   : > { %2758 = vmatpush1.bf16.msra.mxu0 %v3849_v33  ;;  %2789 = vmatprep.mubr.bf16.mxu0 %v3945_v5  ;;  %v3858_v5 = vld [vmem:[%s4905_s13 + $0x140] ss:$8 sps:$4 sm:$0xff]  }
 0x413   : > { %2759 = vmatprep.subr.bf16.mxu0 %v3854_v38  ;;  %3504 = vmatprep.mubr.msk.bf16.mxu1 %vm3946_vm1, %v4745_v6  ;;  %v3880_v33 = vld [vmem:[%s4909_s17] sm:$0xff]  }
 0x416   : > { %2760 = vmatpush1.bf16.msra.mxu0 %v3852_v39  ;;  %v2901_v39 = vld [vmem:[%s4910_s18] sm:$0x1] }
 0x417   : > { %2761 = vmatprep.subr.bf16.mxu0 %v3857_v40 }
 0x41a   : > { %2762 = vmatpush1.bf16.msra.mxu0 %v3855_v41 }
 0x41b   : > { %2763 = vmatprep.subr.bf16.mxu0 %v3860_v42 }
 0x41e   : > { %2764 = vmatpush1.bf16.msra.mxu0 %v3858_v5 }
 0x41f   : > { %2765 = vmatprep.subr.bf16.mxu0 %v3863_v43 }
 0x422   : > { %2766 = vmatpush1.bf16.msra.mxu0 %v3861_v44 }
 0x423   : > { %2767 = vmatprep.subr.bf16.mxu0 %v3866_v45 }
 0x426   : > { %2768 = vmatpush1.bf16.msra.mxu0 %v3864_v46 }
 0x427   : > { %2769 = vmatprep.subr.bf16.mxu0 %v3869_v47 }
 0x42a   : > { %2770 = vmatpush1.bf16.msra.mxu0 %v3867_v48 }
 0x42b   : > { %2771 = vmatprep.subr.bf16.mxu0 %v3872_v49 }
 0x42e   : > { %2772 = vmatpush1.bf16.msra.mxu0 %v3870_v50 }
 0x431   : > { %2790 = vmatmul.mubr.bf16.vlgmr.msra.gmra.mxu0 %v2659_v52 }
 0x4d1   : > { %v2529_v53 = vpop.f32.mrf.mxu0  ;;  %v2650_v54 = vpop.f32.mrf.mxu1 }
 0x4d2   : > { %v2651_v0 = vadd.f32 %v2650_v54, %v2529_v53 }
 0x4d3   : > { %v2531_v55 = vpop.f32.mrf.mxu0  ;;  %v2652_v56 = vpop.f32.mrf.mxu1 }
 0x4d4   : > { %v2653_v3 = vadd.f32 %v2652_v56, %v2531_v55 }
 0x4d5   : > { %v2533_v57 = vpop.f32.mrf.mxu0  ;;  %v2654_v59 = vpop.f32.mrf.mxu1 }
 0x4d7   : > { %v2534_v61 = vpop.f32.mrf.mxu0  ;;  %v2655_v62 = vpop.f32.mrf.mxu1 }
 0x4f1   : > { %v2791_v2 = vpop.f32.mrf.mxu0 }
 0x4f2   : > { %v2798_v4 = vadd.f32 %v2791_v2, %v2651_v0 }
 0x4f3   : > { %v2793_v8 = vpop.f32.mrf.mxu0 }
 0x4f4   : > { %v2812_v9 = vadd.f32 %v2805_v1, %v2798_v4  ;;  %v2799_v10 = vadd.f32 %v2793_v8, %v2653_v3 }
 0x4f5   : > { %v2795_v11 = vpop.f32.mrf.mxu0 }
 0x4f6   : > { %v2813_v12 = vadd.f32 %v2809_v7, %v2799_v10  ;;  %v2814_v14 = vmax.f32 %v2812_v9, 0.0 }
 0x4f7   : > { %v2796_v13 = vpop.f32.mrf.mxu0 }
 0x4f8   : > { %v2815_v15 = vmul.f32 0.05, %v2813_v12 }
 0x4fa   : > { %v2816_v16 = vadd.f32 %v2815_v15, %v2814_v14 }
 0x4fc   : > { %v2823_v18 = vmul.f32 %v2821_v17, %v2816_v16 }
 0x4fe   : > { %v2824_v19 = vpack.c.bf16 %v2823_v18, %v2823_v18 }
 0x500   : > { %v2829_v20 = vsel %vm2827_vm4, %v2824_v19, %v2828_v58 }
 0x501   : > { %2830 = vst [vmem:[#allocation7] sm:$0x3] %v2829_v20 }
 0x508   : > { %v2832_v23 = vld [vmem:[#allocation7] sm:$0x3] }
 0x509   : > { %v2842_v24 = vand.u32 %v2840_v22, %v2832_v23 }
 0x50b   : > { %3503 = vmatpush3.bf16.msra.mxu1 %v2842_v24 }
 0x50c   : > { %3508 = vmatprep.subr.bf16.mxu1 %v4745_v6 }
 0x50e   : > { %3505 = vmatmul.mubr.msk.bf16.vlgmr.msra.gmra.mxu1 %vm2833_vm6, %v2831_v25 }
 0x50f   : > { %3509 = vmatpush3.bf16.msra.mxu1 %v3873_v26  ;;  %3524 = vmatprep.mubr.msk.bf16.mxu1 %vm3946_vm1, %v4745_v6 }
 0x510   : > { %3510 = vmatprep.subr.bf16.mxu1 %v4745_v6 }
 0x513   : > { %3511 = vmatpush3.bf16.msra.mxu1 %v3874_v27 }
 0x514   : > { %3512 = vmatprep.subr.bf16.mxu1 %v4745_v6 }
 0x517   : > { %3513 = vmatpush3.bf16.msra.mxu1 %v3875_v28 }
 0x518   : > { %3514 = vmatprep.subr.bf16.mxu1 %v4745_v6 }
 0x51b   : > { %3515 = vmatpush3.bf16.msra.mxu1 %v3876_v29 }
 0x51c   : > { %3516 = vmatprep.subr.bf16.mxu1 %v4745_v6 }
 0x51f   : > { %3517 = vmatpush3.bf16.msra.mxu1 %v3877_v30 }
 0x520   : > { %3518 = vmatprep.subr.bf16.mxu1 %v4745_v6 }
 0x523   : > { %3519 = vmatpush3.bf16.msra.mxu1 %v3878_v31 }
 0x524   : > { %3520 = vmatprep.subr.bf16.mxu1 %v4745_v6 }
 0x527   : > { %3521 = vmatpush3.bf16.msra.mxu1 %v3879_v32 }
 0x528   : > { %3522 = vmatprep.subr.bf16.mxu1 %v4745_v6 }
 0x52b   : > { %3523 = vmatpush3.bf16.msra.mxu1 %v3880_v33 }
 0x5ce   : > { %v2878_v34 = vpop.f32.mrf.mxu1 }
 0x5cf   : > { %v2884_v35 = vpack.c.bf16 %v2878_v34, %v2878_v34 }
 0x5d0   : > { %v3506_v36 = vpop.f32.mrf.mxu1 }
 0x5d1   : > { %3525 = vmatmul.mubr.bf16.vlgmr.msra.gmra.mxu1 %v2884_v35 }
 0x5d2   : > { %v2881_v37 = vpop.f32.mrf.mxu1 }
 0x5d4   : > { %v3507_v38 = vpop.f32.mrf.mxu1 }
 0x691   : > { %v2984_v6 = vpop.f32.mrf.mxu1 }
 0x692   : > { %v2985_v40 = vadd.f32 %v2984_v6, %v2901_v39 }
 0x693   : > { %v3526_v41 = vpop.f32.mrf.mxu1 }
 0x694   : > { %2990 = vst [vmem:[%s594_s20] sm:$0x1] %v2985_v40 }
 0x695   : > { %v2987_v42 = vpop.f32.mrf.mxu1 }
 0x696   : > { %3895 = shalt.err (!%p3892_p3)
}
 0x697   : > { %s3896_s26 = scalar_lea.hbm %s4851_s28, 16  ;;  %s3900_s0 = scalar_lea.hbm %s4911_s19, 32 }
 0x698   : > { %p3897_p4 = scmp.ne.s32.totalorder %s4851_s28, %s3896_s26  ;;  %p3901_p9 = scmp.lt.s32.totalorder %s4851_s28, %s4911_s19 }
 0x699   : > { %p3902_p10 = scmp.lt.s32.totalorder %s3900_s0, %s3896_s26 }
 0x69a   : > { %p3898_p7 = pnand %p3897_p4, %p4087_p5 }
 0x69b   : > { %p3903_p11 = por %p3902_p10, %p3901_p9 }
 0x69c   : > { %p3899_p8 = pneg %p3898_p7 }
 0x69e   : > { %p3904_p12 = pnand %p3903_p11, %p3899_p8 }
 0x6a0   : > { %3907 = shalt.err (!%p3904_p12)
}
 0x6a1   : > { %3528 = dma.vmem_to_hbm [thread:$0]  (%p4087_p5), %s4853_s25, 16, %s4851_s28, %s2992_s22   ;;  %v3527_v5 = vpop.f32.mrf.mxu1 }
 0x6a2 PF: > { %s4938_s23 = sld [smem:[#allocation13_spill]] }
 0x6a3   : > { %s4939_s2 = sld [smem:[#allocation11_spill]] }
 0x6a8   : > { %p3534_p13 = scmp.ge.s32.totalorder %s4938_s23, 2 }
 0x6a9   : > { %s3016_s4 = sand.u32 1, %s4939_s2  }
 0x6aa   : > { %p3531_p0 = pnand %p3534_p13, %p4091_p6  ;;  %s3017_s20 = scalar_lea.sflag [#allocation9], %s3016_s4 }
 0x6ac   : > { %p3532_p1 = pneg %p3531_p0 }
 0x6ae   : > { %3925 = dma.done.wait (%p3532_p1), %s3017_s20, 16  }
 0x6af   : > { %3927 = vsyncadd (%p3532_p1), %s3017_s20, 4294967280  ;;  %s4941_s21 = sld [smem:[#allocation14_spill]]  ;;  %s4944_s0 = smov %s3934_s30 }
 0x6b0   : > { %s4942_s26 = sld [smem:[#allocation12_spill]] }
 0x6b1   : > { %s4943_s20 = sld [smem:[#allocation15_spill]] }
 0x6b5   : > { %p29_p2 = scmp.ge.s32.totalorder %s4941_s21, 4  }
 0x6b6   : > { %s4945_s30 = smov %s4942_s26 }
 0x6b7   :  { %31 = sbr.rel (!%p29_p2) target bundleno = 9 (0x9), region = 153 }
 0x6bc   :  { %3021 = vsyncpa [#allocation9], 1 }
 0x6bd   :  { %3023 = vsyncpa [#allocation9 + $0x1], 1 }

</bundles_post_ra>
